<compile_context>
chip_gen: v5e
topology: v5e:2x2
jax: 0.10.0
libtpu: 0.0.40
codegen_flags: <defaults>
</compile_context>

<pallas_src>
import functools

import jax
import jax.numpy as jnp
from jax.experimental import pallas as pl
from jax.experimental.pallas import tpu as pltpu

EPS = 1e-6
_GATHER_PREC = jax.lax.Precision.HIGHEST   # exact-ish embedding row selection
_DENSE_PREC = jax.lax.Precision.HIGHEST    # f32 fidelity to the PyTorch module


def fmdeep1_kernel(idx_ref, table_ref,
                   ln0g_ref, ln0b_ref, ln1g_ref, ln1b_ref, ln2g_ref, ln2b_ref,
                   w1t_ref, b1t_ref, w2t_ref, b2_ref,
                   out_ref, *, recip_approx):
    idx = idx_ref[...]                          # (F, Bt) int32, lane-dense batch
    n_idx, bt = idx.shape
    d = table_ref.shape[0] - 1                  # rows 0..D-1: vectors, row D: bias
    n_features = table_ref.shape[1]

    def layer_norm(x, g, b):
        # NOTE(synk): custom LayerNorm assumed: gamma*(x-mean)/(std+eps)+beta with
        # unbiased std and eps=1e-6 (hand-rolled PyTorch LayerNorm). This differs
        # from nn.LayerNorm (biased var, sqrt(var+eps), eps=1e-5).
        # x: (D, Bt) -> normalize over axis 0 (feature dim lives on sublanes).
        mean = jnp.mean(x, axis=0, keepdims=True)                        # (1, Bt)
        xc = x - mean                                                    # centered once
        var = jnp.sum(xc * xc, axis=0, keepdims=True) / (x.shape[0] - 1)
        # approx=True -> EUP vrcp (off the saturated VALU slot); approx=False
        # keeps exact agreement with the f32 reference.
        inv = pl.reciprocal(jnp.sqrt(var) + EPS, approx=recip_approx)    # (1, Bt)
        return g * (xc * inv) + b

    table = table_ref[...]                                               # (D+1, n_feat)
    # Hoist LN0's lane-broadcasts out of the unrolled F-loop (no CSE in JAX).
    ln0g = jnp.broadcast_to(ln0g_ref[...], (d, bt))
    ln0b = jnp.broadcast_to(ln0b_ref[...], (d, bt))

    feat_iota = jax.lax.broadcasted_iota(jnp.int32, (n_features, bt), 0)

    s = jnp.zeros((d, bt), jnp.float32)        # sum_f LN0(v_f)
    sq = jnp.zeros((d, bt), jnp.float32)       # sum_f LN0(v_f)^2
    bias_acc = jnp.zeros((1, bt), jnp.float32)
    for f in range(n_idx):                     # static unroll, F is tiny
        one_hot = (idx[f:f + 1, :] == feat_iota).astype(jnp.float32)     # (n_feat, Bt)
        # In-kernel embedding (+bias) gather on the otherwise-idle MXU.
        g_f = jnp.dot(table, one_hot,
                      preferred_element_type=jnp.float32,
                      precision=_GATHER_PREC)                            # (D+1, Bt)
        bias_acc = bias_acc + g_f[d:d + 1, :]                            # fused bias sum
        vn = layer_norm(g_f[:d, :], ln0g, ln0b)
        s = s + vn
        sq = sq + vn * vn

    fm = 0.5 * (s * s - sq)                                              # FM, (D, Bt)
    x0 = layer_norm(fm, ln1g_ref[...], ln1b_ref[...])
    h1 = jnp.dot(w1t_ref[...], x0, preferred_element_type=jnp.float32,
                 precision=_DENSE_PREC) + b1t_ref[...]                   # lin1
    x1 = layer_norm(h1, ln2g_ref[...], ln2b_ref[...])
    proj = jnp.dot(w2t_ref[...], x1, preferred_element_type=jnp.float32,
                   precision=_DENSE_PREC)                                # lin2, (1, Bt)
    out_ref[...] = proj + bias_acc + b2_ref[...]        # unmasked lane-dense store


def init_params(key, n_features, n_dim):
    ks = jax.random.split(key, 5)
    scale = 1.0 / jnp.sqrt(n_dim)
    return {
        "feat_bias": jax.random.normal(ks[0], (n_features, 1), jnp.float32) * 0.1,
        "feat_vect": jax.random.normal(ks[1], (n_features, n_dim), jnp.float32) * 0.1,
        # glob_bias exists in the module but is unused in forward()
        "glob_bias": jnp.zeros((1, 1), jnp.float32),
        "ln0_g": jnp.ones((1, n_dim), jnp.float32),
        "ln0_b": jnp.zeros((1, n_dim), jnp.float32),
        "ln1_g": jnp.ones((1, n_dim), jnp.float32),
        "ln1_b": jnp.zeros((1, n_dim), jnp.float32),
        "ln2_g": jnp.ones((1, n_dim), jnp.float32),
        "ln2_b": jnp.zeros((1, n_dim), jnp.float32),
        # Linear weights stored as (in, out); PyTorch stores (out, in).
        "w1": jax.random.uniform(ks[2], (n_dim, n_dim), jnp.float32, -scale, scale),
        "b1": jax.random.uniform(ks[3], (1, n_dim), jnp.float32, -scale, scale),
        "w2": jax.random.uniform(ks[4], (n_dim, 1), jnp.float32, -scale, scale),
        "b2": jnp.zeros((1, 1), jnp.float32),
    }


def fmdeep1_forward(idx, params, *, block_b=2048, ln_recip_approx=True):
    """FMDeep1 forward.  idx: (B, F) int32 feature indices.  Returns (B,) logodds."""
    feat_vect = params["feat_vect"].astype(jnp.float32)      # (n_features, D)
    feat_bias = params["feat_bias"].astype(jnp.float32)      # (n_features, 1)
    n_features, d = feat_vect.shape
    b, f = idx.shape

    # Batch tile: lane-dense multiple of 128; clamp so the grid has >= 2 tiles
    # whenever B allows it (v7x has 2 TensorCores; one tile would idle one TC).
    block_b = max(128, (int(block_b) // 128) * 128)
    if b > 128:
        block_b = min(block_b, pl.cdiv(pl.cdiv(b, 2), 128) * 128)
    b_pad = pl.cdiv(b, block_b) * block_b
    num_tiles = b_pad // block_b

    # Lane-dense idx stream (F, B_pad); the ragged tail is padded with index 0
    # (a valid row) and its outputs are discarded.
    idx_t = jnp.pad(idx.astype(jnp.int32), ((0, b_pad - b), (0, 0))).T

    # Augmented transposed table: rows 0..D-1 = feat_vect.T, row D = feat_bias.T,
    # so one MXU gather yields the embedding AND the per-feature bias (no counts).
    table_aug = jnp.concatenate([feat_vect, feat_bias], axis=1).T        # (D+1, n_feat)

    resident = (
        table_aug,
        params["ln0_g"].T, params["ln0_b"].T,     # (D, 1)
        params["ln1_g"].T, params["ln1_b"].T,
        params["ln2_g"].T, params["ln2_b"].T,
        params["w1"].T,                           # (D, D): h1 = w1.T @ x0
        params["b1"].T,                           # (D, 1)
        params["w2"].T,                           # (1, D)
        params["b2"],                             # (1, 1)
    )

    in_specs = [pl.BlockSpec((f, block_b), lambda i: (0, i))] + [
        pl.BlockSpec(x.shape, lambda i, n=x.ndim: (0,) * n) for x in resident
    ]

    out = pl.pallas_call(
        functools.partial(fmdeep1_kernel, recip_approx=ln_recip_approx),
        grid=(num_tiles,),
        in_specs=in_specs,
        out_specs=pl.BlockSpec((1, block_b), lambda i: (0, i)),
        out_shape=jax.ShapeDtypeStruct((1, b_pad), jnp.float32),
        compiler_params=pltpu.CompilerParams(
            dimension_semantics=("parallel",),            # megacore-shard the batch
            vmem_limit_bytes=32 * 1024 * 1024,            # few-MB footprint; safe on v7x
        ),
    )(idx_t, *resident)

    return out[0, :b]                                     # (B,) logodds


def fmdeep1_reference(idx, params):
    """Pure-JAX reference for correctness checking (module semantics, f32)."""
    hp = jax.lax.Precision.HIGHEST

    def layer_norm(x, g, b):
        mean = jnp.mean(x, axis=-1, keepdims=True)
        var = jnp.sum((x - mean) ** 2, axis=-1, keepdims=True) / (x.shape[-1] - 1)
        return g * (x - mean) / (jnp.sqrt(var) + EPS) + b

    vect = params["feat_vect"][idx]                       # (B, F, D)
    bias = params["feat_bias"][idx, 0]                    # (B, F)
    vn = layer_norm(vect, params["ln0_g"][0], params["ln0_b"][0])
    s = jnp.sum(vn, axis=1)
    fm = 0.5 * (s * s - jnp.sum(vn * vn, axis=1))
    x0 = layer_norm(fm, params["ln1_g"], params["ln1_b"])
    x1 = layer_norm(jnp.dot(x0, params["w1"], precision=hp) + params["b1"],
                    params["ln2_g"], params["ln2_b"])
    x2 = jnp.dot(x1, params["w2"], precision=hp) + params["b2"]
    return bias.sum(axis=1) + x2[:, 0]


if __name__ == "__main__":
    B, F, D = 200, 4, 32          # batch, feature-indices per sample, embedding dim
    n_features = 16
    key = jax.random.PRNGKey(0)
    k_idx, k_params = jax.random.split(key)

    idx = jax.random.randint(k_idx, (B, F), 0, n_features, dtype=jnp.int32)
    params = init_params(k_params, n_features, D)

    ref = jax.block_until_ready(fmdeep1_reference(idx, params))

    # Exact-reciprocal path: tight agreement with the f32 reference.
    exact = jax.block_until_ready(
        fmdeep1_forward(idx, params, block_b=2048, ln_recip_approx=False))
    assert exact.shape == (B,)
    assert jnp.allclose(exact, ref, atol=2e-4, rtol=2e-4), (exact, ref)

    # Production path (review item): LN reciprocal on the EUP.  Looser tolerance
    # budgets the approximate reciprocal propagated through FM + two LayerNorms.
    approx = jax.block_until_ready(
        fmdeep1_forward(idx, params, block_b=2048, ln_recip_approx=True))
    assert approx.shape == (B,)
    assert jnp.allclose(approx, ref, atol=5e-3, rtol=5e-3), (approx, ref)

    print("KERNEL_OK")
</pallas_src>

<mosaic_0001>
module attributes {stable_mosaic.version = 11 : i64} {
  func.func @fmdeep1_kernel(%arg0: i32, %arg1: memref<4x128xi32, #tpu.memory_space<vmem>>, %arg2: memref<33x16xf32, #tpu.memory_space<vmem>>, %arg3: memref<32x1xf32, #tpu.memory_space<vmem>>, %arg4: memref<32x1xf32, #tpu.memory_space<vmem>>, %arg5: memref<32x1xf32, #tpu.memory_space<vmem>>, %arg6: memref<32x1xf32, #tpu.memory_space<vmem>>, %arg7: memref<32x1xf32, #tpu.memory_space<vmem>>, %arg8: memref<32x1xf32, #tpu.memory_space<vmem>>, %arg9: memref<32x32xf32, #tpu.memory_space<vmem>>, %arg10: memref<32x1xf32, #tpu.memory_space<vmem>>, %arg11: memref<1x32xf32, #tpu.memory_space<vmem>>, %arg12: memref<1x1xf32, #tpu.memory_space<vmem>>, %arg13: memref<1x128xf32, #tpu.memory_space<vmem>>) attributes {dimension_semantics = [#tpu.dimension_semantics<parallel>], iteration_bounds = array<i64: 2>, scalar_prefetch = 0 : i64, scratch_operands = 0 : i64, tpu.core_type = #tpu.core_type<tc>, window_params = [{transform_indices = @transform_0, window_bounds = array<i64: 4, 128>}, {pipeline_mode = #tpu.pipeline_mode<synchronous>, transform_indices = @transform_1, window_bounds = array<i64: 33, 16>}, {pipeline_mode = #tpu.pipeline_mode<synchronous>, transform_indices = @transform_2, window_bounds = array<i64: 32, 1>}, {pipeline_mode = #tpu.pipeline_mode<synchronous>, transform_indices = @transform_3, window_bounds = array<i64: 32, 1>}, {pipeline_mode = #tpu.pipeline_mode<synchronous>, transform_indices = @transform_4, window_bounds = array<i64: 32, 1>}, {pipeline_mode = #tpu.pipeline_mode<synchronous>, transform_indices = @transform_5, window_bounds = array<i64: 32, 1>}, {pipeline_mode = #tpu.pipeline_mode<synchronous>, transform_indices = @transform_6, window_bounds = array<i64: 32, 1>}, {pipeline_mode = #tpu.pipeline_mode<synchronous>, transform_indices = @transform_7, window_bounds = array<i64: 32, 1>}, {pipeline_mode = #tpu.pipeline_mode<synchronous>, transform_indices = @transform_8, window_bounds = array<i64: 32, 32>}, {pipeline_mode = #tpu.pipeline_mode<synchronous>, transform_indices = @transform_9, window_bounds = array<i64: 32, 1>}, {pipeline_mode = #tpu.pipeline_mode<synchronous>, transform_indices = @transform_10, window_bounds = array<i64: 1, 32>}, {pipeline_mode = #tpu.pipeline_mode<synchronous>, transform_indices = @transform_11, window_bounds = array<i64: 1, 1>}, {transform_indices = @transform_12, window_bounds = array<i64: 1, 128>}]} {
    %c0 = arith.constant 0 : index
    %c0_0 = arith.constant 0 : index
    %0 = vector.load %arg1[%c0, %c0_0] : memref<4x128xi32, #tpu.memory_space<vmem>>, vector<4x128xi32>
    %c0_1 = arith.constant 0 : index
    %c0_2 = arith.constant 0 : index
    %1 = vector.load %arg2[%c0_1, %c0_2] : memref<33x16xf32, #tpu.memory_space<vmem>>, vector<33x16xf32>
    %c0_3 = arith.constant 0 : index
    %c0_4 = arith.constant 0 : index
    %2 = vector.load %arg3[%c0_3, %c0_4] : memref<32x1xf32, #tpu.memory_space<vmem>>, vector<32x1xf32>
    %3 = vector.shape_cast %2 : vector<32x1xf32> to vector<32x1xf32>
    %4 = vector.broadcast %3 : vector<32x1xf32> to vector<32x128xf32>
    %c0_5 = arith.constant 0 : index
    %c0_6 = arith.constant 0 : index
    %5 = vector.load %arg4[%c0_5, %c0_6] : memref<32x1xf32, #tpu.memory_space<vmem>>, vector<32x1xf32>
    %6 = vector.shape_cast %5 : vector<32x1xf32> to vector<32x1xf32>
    %7 = vector.broadcast %6 : vector<32x1xf32> to vector<32x128xf32>
    %8 = tpu.iota {dimensions = array<i32: 0>} : vector<16x128xi32>
    %cst = arith.constant 0.000000e+00 : f32
    %9 = vector.broadcast %cst : f32 to vector<32x128xf32>
    %cst_7 = arith.constant 0.000000e+00 : f32
    %10 = vector.broadcast %cst_7 : f32 to vector<32x128xf32>
    %cst_8 = arith.constant 0.000000e+00 : f32
    %11 = vector.broadcast %cst_8 : f32 to vector<1x128xf32>
    %12 = vector.extract_strided_slice %0 {offsets = [0, 0], sizes = [1, 128], strides = [1, 1]} : vector<4x128xi32> to vector<1x128xi32>
    %13 = vector.broadcast %12 : vector<1x128xi32> to vector<16x128xi32>
    %14 = arith.cmpi eq, %13, %8 : vector<16x128xi32>
    %15 = arith.extui %14 : vector<16x128xi1> to vector<16x128xi32>
    %16 = arith.sitofp %15 : vector<16x128xi32> to vector<16x128xf32>
    %cst_9 = arith.constant dense<0.000000e+00> : vector<33x128xf32>
    %17 = tpu.matmul %1, %16, %cst_9 {dimension_numbers = #tpu.dot_dimension_numbers<[1], [0], [0], [1], [0, 0, 1, 1], [], []>, precision = #tpu.contract_precision<fp32>} : vector<33x16xf32>, vector<16x128xf32>, vector<33x128xf32> -> vector<33x128xf32>
    %18 = vector.extract_strided_slice %17 {offsets = [32, 0], sizes = [1, 128], strides = [1, 1]} : vector<33x128xf32> to vector<1x128xf32>
    %19 = arith.addf %11, %18 : vector<1x128xf32>
    %20 = vector.extract_strided_slice %17 {offsets = [0, 0], sizes = [32, 128], strides = [1, 1]} : vector<33x128xf32> to vector<32x128xf32>
    %cst_10 = arith.constant dense<0.000000e+00> : vector<128xf32>
    %21 = vector.multi_reduction <add>, %20, %cst_10 [0] : vector<32x128xf32> to vector<128xf32>
    %22 = vector.shape_cast %21 : vector<128xf32> to vector<1x128xf32>
    %cst_11 = arith.constant 3.200000e+01 : f32
    %23 = vector.broadcast %cst_11 : f32 to vector<1x128xf32>
    %24 = arith.divf %22, %23 : vector<1x128xf32>
    %25 = vector.broadcast %24 : vector<1x128xf32> to vector<32x128xf32>
    %26 = arith.subf %20, %25 : vector<32x128xf32>
    %27 = arith.mulf %26, %26 : vector<32x128xf32>
    %cst_12 = arith.constant dense<0.000000e+00> : vector<128xf32>
    %28 = vector.multi_reduction <add>, %27, %cst_12 [0] : vector<32x128xf32> to vector<128xf32>
    %29 = vector.shape_cast %28 : vector<128xf32> to vector<1x128xf32>
    %cst_13 = arith.constant 3.100000e+01 : f32
    %30 = vector.broadcast %cst_13 : f32 to vector<1x128xf32>
    %31 = arith.divf %29, %30 : vector<1x128xf32>
    %32 = math.sqrt %31 : vector<1x128xf32>
    %cst_14 = arith.constant 9.99999997E-7 : f32
    %33 = vector.broadcast %cst_14 : f32 to vector<1x128xf32>
    %34 = arith.addf %32, %33 : vector<1x128xf32>
    %35 = tpu.reciprocal %34 : vector<1x128xf32> -> vector<1x128xf32>
    %36 = vector.broadcast %35 : vector<1x128xf32> to vector<32x128xf32>
    %37 = arith.mulf %26, %36 : vector<32x128xf32>
    %38 = arith.mulf %4, %37 : vector<32x128xf32>
    %39 = arith.addf %38, %7 : vector<32x128xf32>
    %40 = arith.addf %9, %39 : vector<32x128xf32>
    %41 = arith.mulf %39, %39 : vector<32x128xf32>
    %42 = arith.addf %10, %41 : vector<32x128xf32>
    %43 = vector.extract_strided_slice %0 {offsets = [1, 0], sizes = [1, 128], strides = [1, 1]} : vector<4x128xi32> to vector<1x128xi32>
    %44 = vector.broadcast %43 : vector<1x128xi32> to vector<16x128xi32>
    %45 = arith.cmpi eq, %44, %8 : vector<16x128xi32>
    %46 = arith.extui %45 : vector<16x128xi1> to vector<16x128xi32>
    %47 = arith.sitofp %46 : vector<16x128xi32> to vector<16x128xf32>
    %cst_15 = arith.constant dense<0.000000e+00> : vector<33x128xf32>
    %48 = tpu.matmul %1, %47, %cst_15 {dimension_numbers = #tpu.dot_dimension_numbers<[1], [0], [0], [1], [0, 0, 1, 1], [], []>, precision = #tpu.contract_precision<fp32>} : vector<33x16xf32>, vector<16x128xf32>, vector<33x128xf32> -> vector<33x128xf32>
    %49 = vector.extract_strided_slice %48 {offsets = [32, 0], sizes = [1, 128], strides = [1, 1]} : vector<33x128xf32> to vector<1x128xf32>
    %50 = arith.addf %19, %49 : vector<1x128xf32>
    %51 = vector.extract_strided_slice %48 {offsets = [0, 0], sizes = [32, 128], strides = [1, 1]} : vector<33x128xf32> to vector<32x128xf32>
    %cst_16 = arith.constant dense<0.000000e+00> : vector<128xf32>
    %52 = vector.multi_reduction <add>, %51, %cst_16 [0] : vector<32x128xf32> to vector<128xf32>
    %53 = vector.shape_cast %52 : vector<128xf32> to vector<1x128xf32>
    %cst_17 = arith.constant 3.200000e+01 : f32
    %54 = vector.broadcast %cst_17 : f32 to vector<1x128xf32>
    %55 = arith.divf %53, %54 : vector<1x128xf32>
    %56 = vector.broadcast %55 : vector<1x128xf32> to vector<32x128xf32>
    %57 = arith.subf %51, %56 : vector<32x128xf32>
    %58 = arith.mulf %57, %57 : vector<32x128xf32>
    %cst_18 = arith.constant dense<0.000000e+00> : vector<128xf32>
    %59 = vector.multi_reduction <add>, %58, %cst_18 [0] : vector<32x128xf32> to vector<128xf32>
    %60 = vector.shape_cast %59 : vector<128xf32> to vector<1x128xf32>
    %cst_19 = arith.constant 3.100000e+01 : f32
    %61 = vector.broadcast %cst_19 : f32 to vector<1x128xf32>
    %62 = arith.divf %60, %61 : vector<1x128xf32>
    %63 = math.sqrt %62 : vector<1x128xf32>
    %cst_20 = arith.constant 9.99999997E-7 : f32
    %64 = vector.broadcast %cst_20 : f32 to vector<1x128xf32>
    %65 = arith.addf %63, %64 : vector<1x128xf32>
    %66 = tpu.reciprocal %65 : vector<1x128xf32> -> vector<1x128xf32>
    %67 = vector.broadcast %66 : vector<1x128xf32> to vector<32x128xf32>
    %68 = arith.mulf %57, %67 : vector<32x128xf32>
    %69 = arith.mulf %4, %68 : vector<32x128xf32>
    %70 = arith.addf %69, %7 : vector<32x128xf32>
    %71 = arith.addf %40, %70 : vector<32x128xf32>
    %72 = arith.mulf %70, %70 : vector<32x128xf32>
    %73 = arith.addf %42, %72 : vector<32x128xf32>
    %74 = vector.extract_strided_slice %0 {offsets = [2, 0], sizes = [1, 128], strides = [1, 1]} : vector<4x128xi32> to vector<1x128xi32>
    %75 = vector.broadcast %74 : vector<1x128xi32> to vector<16x128xi32>
    %76 = arith.cmpi eq, %75, %8 : vector<16x128xi32>
    %77 = arith.extui %76 : vector<16x128xi1> to vector<16x128xi32>
    %78 = arith.sitofp %77 : vector<16x128xi32> to vector<16x128xf32>
    %cst_21 = arith.constant dense<0.000000e+00> : vector<33x128xf32>
    %79 = tpu.matmul %1, %78, %cst_21 {dimension_numbers = #tpu.dot_dimension_numbers<[1], [0], [0], [1], [0, 0, 1, 1], [], []>, precision = #tpu.contract_precision<fp32>} : vector<33x16xf32>, vector<16x128xf32>, vector<33x128xf32> -> vector<33x128xf32>
    %80 = vector.extract_strided_slice %79 {offsets = [32, 0], sizes = [1, 128], strides = [1, 1]} : vector<33x128xf32> to vector<1x128xf32>
    %81 = arith.addf %50, %80 : vector<1x128xf32>
    %82 = vector.extract_strided_slice %79 {offsets = [0, 0], sizes = [32, 128], strides = [1, 1]} : vector<33x128xf32> to vector<32x128xf32>
    %cst_22 = arith.constant dense<0.000000e+00> : vector<128xf32>
    %83 = vector.multi_reduction <add>, %82, %cst_22 [0] : vector<32x128xf32> to vector<128xf32>
    %84 = vector.shape_cast %83 : vector<128xf32> to vector<1x128xf32>
    %cst_23 = arith.constant 3.200000e+01 : f32
    %85 = vector.broadcast %cst_23 : f32 to vector<1x128xf32>
    %86 = arith.divf %84, %85 : vector<1x128xf32>
    %87 = vector.broadcast %86 : vector<1x128xf32> to vector<32x128xf32>
    %88 = arith.subf %82, %87 : vector<32x128xf32>
    %89 = arith.mulf %88, %88 : vector<32x128xf32>
    %cst_24 = arith.constant dense<0.000000e+00> : vector<128xf32>
    %90 = vector.multi_reduction <add>, %89, %cst_24 [0] : vector<32x128xf32> to vector<128xf32>
    %91 = vector.shape_cast %90 : vector<128xf32> to vector<1x128xf32>
    %cst_25 = arith.constant 3.100000e+01 : f32
    %92 = vector.broadcast %cst_25 : f32 to vector<1x128xf32>
    %93 = arith.divf %91, %92 : vector<1x128xf32>
    %94 = math.sqrt %93 : vector<1x128xf32>
    %cst_26 = arith.constant 9.99999997E-7 : f32
    %95 = vector.broadcast %cst_26 : f32 to vector<1x128xf32>
    %96 = arith.addf %94, %95 : vector<1x128xf32>
    %97 = tpu.reciprocal %96 : vector<1x128xf32> -> vector<1x128xf32>
    %98 = vector.broadcast %97 : vector<1x128xf32> to vector<32x128xf32>
    %99 = arith.mulf %88, %98 : vector<32x128xf32>
    %100 = arith.mulf %4, %99 : vector<32x128xf32>
    %101 = arith.addf %100, %7 : vector<32x128xf32>
    %102 = arith.addf %71, %101 : vector<32x128xf32>
    %103 = arith.mulf %101, %101 : vector<32x128xf32>
    %104 = arith.addf %73, %103 : vector<32x128xf32>
    %105 = vector.extract_strided_slice %0 {offsets = [3, 0], sizes = [1, 128], strides = [1, 1]} : vector<4x128xi32> to vector<1x128xi32>
    %106 = vector.broadcast %105 : vector<1x128xi32> to vector<16x128xi32>
    %107 = arith.cmpi eq, %106, %8 : vector<16x128xi32>
    %108 = arith.extui %107 : vector<16x128xi1> to vector<16x128xi32>
    %109 = arith.sitofp %108 : vector<16x128xi32> to vector<16x128xf32>
    %cst_27 = arith.constant dense<0.000000e+00> : vector<33x128xf32>
    %110 = tpu.matmul %1, %109, %cst_27 {dimension_numbers = #tpu.dot_dimension_numbers<[1], [0], [0], [1], [0, 0, 1, 1], [], []>, precision = #tpu.contract_precision<fp32>} : vector<33x16xf32>, vector<16x128xf32>, vector<33x128xf32> -> vector<33x128xf32>
    %111 = vector.extract_strided_slice %110 {offsets = [32, 0], sizes = [1, 128], strides = [1, 1]} : vector<33x128xf32> to vector<1x128xf32>
    %112 = arith.addf %81, %111 : vector<1x128xf32>
    %113 = vector.extract_strided_slice %110 {offsets = [0, 0], sizes = [32, 128], strides = [1, 1]} : vector<33x128xf32> to vector<32x128xf32>
    %cst_28 = arith.constant dense<0.000000e+00> : vector<128xf32>
    %114 = vector.multi_reduction <add>, %113, %cst_28 [0] : vector<32x128xf32> to vector<128xf32>
    %115 = vector.shape_cast %114 : vector<128xf32> to vector<1x128xf32>
    %cst_29 = arith.constant 3.200000e+01 : f32
    %116 = vector.broadcast %cst_29 : f32 to vector<1x128xf32>
    %117 = arith.divf %115, %116 : vector<1x128xf32>
    %118 = vector.broadcast %117 : vector<1x128xf32> to vector<32x128xf32>
    %119 = arith.subf %113, %118 : vector<32x128xf32>
    %120 = arith.mulf %119, %119 : vector<32x128xf32>
    %cst_30 = arith.constant dense<0.000000e+00> : vector<128xf32>
    %121 = vector.multi_reduction <add>, %120, %cst_30 [0] : vector<32x128xf32> to vector<128xf32>
    %122 = vector.shape_cast %121 : vector<128xf32> to vector<1x128xf32>
    %cst_31 = arith.constant 3.100000e+01 : f32
    %123 = vector.broadcast %cst_31 : f32 to vector<1x128xf32>
    %124 = arith.divf %122, %123 : vector<1x128xf32>
    %125 = math.sqrt %124 : vector<1x128xf32>
    %cst_32 = arith.constant 9.99999997E-7 : f32
    %126 = vector.broadcast %cst_32 : f32 to vector<1x128xf32>
    %127 = arith.addf %125, %126 : vector<1x128xf32>
    %128 = tpu.reciprocal %127 : vector<1x128xf32> -> vector<1x128xf32>
    %129 = vector.broadcast %128 : vector<1x128xf32> to vector<32x128xf32>
    %130 = arith.mulf %119, %129 : vector<32x128xf32>
    %131 = arith.mulf %4, %130 : vector<32x128xf32>
    %132 = arith.addf %131, %7 : vector<32x128xf32>
    %133 = arith.addf %102, %132 : vector<32x128xf32>
    %134 = arith.mulf %132, %132 : vector<32x128xf32>
    %135 = arith.addf %104, %134 : vector<32x128xf32>
    %136 = arith.mulf %133, %133 : vector<32x128xf32>
    %137 = arith.subf %136, %135 : vector<32x128xf32>
    %cst_33 = arith.constant 5.000000e-01 : f32
    %138 = vector.broadcast %cst_33 : f32 to vector<32x128xf32>
    %139 = arith.mulf %138, %137 : vector<32x128xf32>
    %c0_34 = arith.constant 0 : index
    %c0_35 = arith.constant 0 : index
    %140 = vector.load %arg5[%c0_34, %c0_35] : memref<32x1xf32, #tpu.memory_space<vmem>>, vector<32x1xf32>
    %c0_36 = arith.constant 0 : index
    %c0_37 = arith.constant 0 : index
    %141 = vector.load %arg6[%c0_36, %c0_37] : memref<32x1xf32, #tpu.memory_space<vmem>>, vector<32x1xf32>
    %cst_38 = arith.constant dense<0.000000e+00> : vector<128xf32>
    %142 = vector.multi_reduction <add>, %139, %cst_38 [0] : vector<32x128xf32> to vector<128xf32>
    %143 = vector.shape_cast %142 : vector<128xf32> to vector<1x128xf32>
    %cst_39 = arith.constant 3.200000e+01 : f32
    %144 = vector.broadcast %cst_39 : f32 to vector<1x128xf32>
    %145 = arith.divf %143, %144 : vector<1x128xf32>
    %146 = vector.broadcast %145 : vector<1x128xf32> to vector<32x128xf32>
    %147 = arith.subf %139, %146 : vector<32x128xf32>
    %148 = arith.mulf %147, %147 : vector<32x128xf32>
    %cst_40 = arith.constant dense<0.000000e+00> : vector<128xf32>
    %149 = vector.multi_reduction <add>, %148, %cst_40 [0] : vector<32x128xf32> to vector<128xf32>
    %150 = vector.shape_cast %149 : vector<128xf32> to vector<1x128xf32>
    %cst_41 = arith.constant 3.100000e+01 : f32
    %151 = vector.broadcast %cst_41 : f32 to vector<1x128xf32>
    %152 = arith.divf %150, %151 : vector<1x128xf32>
    %153 = math.sqrt %152 : vector<1x128xf32>
    %cst_42 = arith.constant 9.99999997E-7 : f32
    %154 = vector.broadcast %cst_42 : f32 to vector<1x128xf32>
    %155 = arith.addf %153, %154 : vector<1x128xf32>
    %156 = tpu.reciprocal %155 : vector<1x128xf32> -> vector<1x128xf32>
    %157 = vector.broadcast %156 : vector<1x128xf32> to vector<32x128xf32>
    %158 = arith.mulf %147, %157 : vector<32x128xf32>
    %159 = vector.broadcast %140 : vector<32x1xf32> to vector<32x128xf32>
    %160 = arith.mulf %159, %158 : vector<32x128xf32>
    %161 = vector.broadcast %141 : vector<32x1xf32> to vector<32x128xf32>
    %162 = arith.addf %160, %161 : vector<32x128xf32>
    %c0_43 = arith.constant 0 : index
    %c0_44 = arith.constant 0 : index
    %163 = vector.load %arg9[%c0_43, %c0_44] : memref<32x32xf32, #tpu.memory_space<vmem>>, vector<32x32xf32>
    %cst_45 = arith.constant dense<0.000000e+00> : vector<32x128xf32>
    %164 = tpu.matmul %163, %162, %cst_45 {dimension_numbers = #tpu.dot_dimension_numbers<[1], [0], [0], [1], [0, 0, 1, 1], [], []>, precision = #tpu.contract_precision<fp32>} : vector<32x32xf32>, vector<32x128xf32>, vector<32x128xf32> -> vector<32x128xf32>
    %c0_46 = arith.constant 0 : index
    %c0_47 = arith.constant 0 : index
    %165 = vector.load %arg10[%c0_46, %c0_47] : memref<32x1xf32, #tpu.memory_space<vmem>>, vector<32x1xf32>
    %166 = vector.broadcast %165 : vector<32x1xf32> to vector<32x128xf32>
    %167 = arith.addf %164, %166 : vector<32x128xf32>
    %c0_48 = arith.constant 0 : index
    %c0_49 = arith.constant 0 : index
    %168 = vector.load %arg7[%c0_48, %c0_49] : memref<32x1xf32, #tpu.memory_space<vmem>>, vector<32x1xf32>
    %c0_50 = arith.constant 0 : index
    %c0_51 = arith.constant 0 : index
    %169 = vector.load %arg8[%c0_50, %c0_51] : memref<32x1xf32, #tpu.memory_space<vmem>>, vector<32x1xf32>
    %cst_52 = arith.constant dense<0.000000e+00> : vector<128xf32>
    %170 = vector.multi_reduction <add>, %167, %cst_52 [0] : vector<32x128xf32> to vector<128xf32>
    %171 = vector.shape_cast %170 : vector<128xf32> to vector<1x128xf32>
    %cst_53 = arith.constant 3.200000e+01 : f32
    %172 = vector.broadcast %cst_53 : f32 to vector<1x128xf32>
    %173 = arith.divf %171, %172 : vector<1x128xf32>
    %174 = vector.broadcast %173 : vector<1x128xf32> to vector<32x128xf32>
    %175 = arith.subf %167, %174 : vector<32x128xf32>
    %176 = arith.mulf %175, %175 : vector<32x128xf32>
    %cst_54 = arith.constant dense<0.000000e+00> : vector<128xf32>
    %177 = vector.multi_reduction <add>, %176, %cst_54 [0] : vector<32x128xf32> to vector<128xf32>
    %178 = vector.shape_cast %177 : vector<128xf32> to vector<1x128xf32>
    %cst_55 = arith.constant 3.100000e+01 : f32
    %179 = vector.broadcast %cst_55 : f32 to vector<1x128xf32>
    %180 = arith.divf %178, %179 : vector<1x128xf32>
    %181 = math.sqrt %180 : vector<1x128xf32>
    %cst_56 = arith.constant 9.99999997E-7 : f32
    %182 = vector.broadcast %cst_56 : f32 to vector<1x128xf32>
    %183 = arith.addf %181, %182 : vector<1x128xf32>
    %184 = tpu.reciprocal %183 : vector<1x128xf32> -> vector<1x128xf32>
    %185 = vector.broadcast %184 : vector<1x128xf32> to vector<32x128xf32>
    %186 = arith.mulf %175, %185 : vector<32x128xf32>
    %187 = vector.broadcast %168 : vector<32x1xf32> to vector<32x128xf32>
    %188 = arith.mulf %187, %186 : vector<32x128xf32>
    %189 = vector.broadcast %169 : vector<32x1xf32> to vector<32x128xf32>
    %190 = arith.addf %188, %189 : vector<32x128xf32>
    %c0_57 = arith.constant 0 : index
    %c0_58 = arith.constant 0 : index
    %191 = vector.load %arg11[%c0_57, %c0_58] : memref<1x32xf32, #tpu.memory_space<vmem>>, vector<1x32xf32>
    %cst_59 = arith.constant dense<0.000000e+00> : vector<1x128xf32>
    %192 = tpu.matmul %191, %190, %cst_59 {dimension_numbers = #tpu.dot_dimension_numbers<[1], [0], [0], [1], [0, 0, 1, 1], [], []>, precision = #tpu.contract_precision<fp32>} : vector<1x32xf32>, vector<32x128xf32>, vector<1x128xf32> -> vector<1x128xf32>
    %193 = arith.addf %192, %112 : vector<1x128xf32>
    %c0_60 = arith.constant 0 : index
    %c0_61 = arith.constant 0 : index
    %194 = vector.load %arg12[%c0_60, %c0_61] : memref<1x1xf32, #tpu.memory_space<vmem>>, vector<1x1xf32>
    %195 = vector.broadcast %194 : vector<1x1xf32> to vector<1x128xf32>
    %196 = arith.addf %193, %195 : vector<1x128xf32>
    %c0_62 = arith.constant 0 : index
    %c0_63 = arith.constant 0 : index
    %197 = vector.load %arg13[%c0_62, %c0_63] : memref<1x128xf32, #tpu.memory_space<vmem>>, vector<1x128xf32>
    tpu.vector_store %arg13[%c0_62, %c0_63], %196 {strides = array<i32>} : memref<1x128xf32, #tpu.memory_space<vmem>>, vector<1x128xf32>,
    return
  }
  func.func @transform_0(%arg0: i32) -> (i32, i32) {
    %c0_i32 = arith.constant 0 : i32
    %c0_i32_0 = arith.constant 0 : i32
    return %c0_i32, %arg0 : i32, i32
  }
  func.func @transform_1(%arg0: i32) -> (i32, i32) {
    %c0_i32 = arith.constant 0 : i32
    %c0_i32_0 = arith.constant 0 : i32
    %c0_i32_1 = arith.constant 0 : i32
    return %c0_i32, %c0_i32_0 : i32, i32
  }
  func.func @transform_2(%arg0: i32) -> (i32, i32) {
    %c0_i32 = arith.constant 0 : i32
    %c0_i32_0 = arith.constant 0 : i32
    %c0_i32_1 = arith.constant 0 : i32
    return %c0_i32, %c0_i32_0 : i32, i32
  }
  func.func @transform_3(%arg0: i32) -> (i32, i32) {
    %c0_i32 = arith.constant 0 : i32
    %c0_i32_0 = arith.constant 0 : i32
    %c0_i32_1 = arith.constant 0 : i32
    return %c0_i32, %c0_i32_0 : i32, i32
  }
  func.func @transform_4(%arg0: i32) -> (i32, i32) {
    %c0_i32 = arith.constant 0 : i32
    %c0_i32_0 = arith.constant 0 : i32
    %c0_i32_1 = arith.constant 0 : i32
    return %c0_i32, %c0_i32_0 : i32, i32
  }
  func.func @transform_5(%arg0: i32) -> (i32, i32) {
    %c0_i32 = arith.constant 0 : i32
    %c0_i32_0 = arith.constant 0 : i32
    %c0_i32_1 = arith.constant 0 : i32
    return %c0_i32, %c0_i32_0 : i32, i32
  }
  func.func @transform_6(%arg0: i32) -> (i32, i32) {
    %c0_i32 = arith.constant 0 : i32
    %c0_i32_0 = arith.constant 0 : i32
    %c0_i32_1 = arith.constant 0 : i32
    return %c0_i32, %c0_i32_0 : i32, i32
  }
  func.func @transform_7(%arg0: i32) -> (i32, i32) {
    %c0_i32 = arith.constant 0 : i32
    %c0_i32_0 = arith.constant 0 : i32
    %c0_i32_1 = arith.constant 0 : i32
    return %c0_i32, %c0_i32_0 : i32, i32
  }
  func.func @transform_8(%arg0: i32) -> (i32, i32) {
    %c0_i32 = arith.constant 0 : i32
    %c0_i32_0 = arith.constant 0 : i32
    %c0_i32_1 = arith.constant 0 : i32
    return %c0_i32, %c0_i32_0 : i32, i32
  }
  func.func @transform_9(%arg0: i32) -> (i32, i32) {
    %c0_i32 = arith.constant 0 : i32
    %c0_i32_0 = arith.constant 0 : i32
    %c0_i32_1 = arith.constant 0 : i32
    return %c0_i32, %c0_i32_0 : i32, i32
  }
  func.func @transform_10(%arg0: i32) -> (i32, i32) {
    %c0_i32 = arith.constant 0 : i32
    %c0_i32_0 = arith.constant 0 : i32
    %c0_i32_1 = arith.constant 0 : i32
    return %c0_i32, %c0_i32_0 : i32, i32
  }
  func.func @transform_11(%arg0: i32) -> (i32, i32) {
    %c0_i32 = arith.constant 0 : i32
    %c0_i32_0 = arith.constant 0 : i32
    %c0_i32_1 = arith.constant 0 : i32
    return %c0_i32, %c0_i32_0 : i32, i32
  }
  func.func @transform_12(%arg0: i32) -> (i32, i32) {
    %c0_i32 = arith.constant 0 : i32
    %c0_i32_0 = arith.constant 0 : i32
    return %c0_i32, %arg0 : i32, i32
  }
}

</mosaic_0001>

<bundles_post_ra>
// kernel: tpu_custom_call.1
= control target key start
LH: loop header
LB: loop body
LE: loop exit
PB: predicated region body
PF: predicated region fallthrough
CT: control target
= control target key end

     0   :  { %s3925_s0 = inlined_call_operand.vmem [shape: s32[4,256], index: 0, kind: input, shape index: {}]   ;;  %s3926_s1 = inlined_call_operand.vmem [shape: f32[33,16], index: 1, kind: input, shape index: {}]   ;;  %s3927_s2 = inlined_call_operand.vmem [shape: f32[32,1], index: 2, kind: input, shape index: {}]   ;;  %s3928_s3 = inlined_call_operand.vmem [shape: f32[32,1], index: 3, kind: input, shape index: {}]   ;;  %s3929_s4 = inlined_call_operand.vmem [shape: f32[32,1], index: 4, kind: input, shape index: {}]   ;;  %s3930_s5 = inlined_call_operand.vmem [shape: f32[32,1], index: 5, kind: input, shape index: {}]   ;;  %s3931_s6 = inlined_call_operand.vmem [shape: f32[32,1], index: 6, kind: input, shape index: {}]   ;;  %s3932_s7 = inlined_call_operand.vmem [shape: f32[32,1], index: 7, kind: input, shape index: {}]   ;;  %s3933_s8 = inlined_call_operand.vmem [shape: f32[32,32], index: 8, kind: input, shape index: {}]   ;;  %s3934_s9 = inlined_call_operand.vmem [shape: f32[32,1], index: 9, kind: input, shape index: {}]   ;;  %s3935_s10 = inlined_call_operand.vmem [shape: f32[1,32], index: 10, kind: input, shape index: {}]   ;;  %s3936_s11 = inlined_call_operand.<no memory space> [shape: f32[1,1], index: 11, kind: input, shape index: {}]   ;;  %s3937_s12 = inlined_call_operand.hbm [shape: f32[1,256], index: 12, kind: output, shape index: {}]  }
   0x1   :  { %3938 = sst [smem:[#allocation6_spill]] %s3925_s0  ;;  %v17_v0 = vstv %s3936_s11 }
   0x2   :  { %18 = vst [vmem:[#allocation2] sm:$0x1] %v17_v0 }
   0x3   :  { %19 = vsyncpa [#allocation4], 0 }
   0x4   :  { %21 = vsyncpa [#allocation4 + $0x1], 0  ;;  %s3055_s23 = smov 0   ;;  %s3057_s24 = smov 0  }
   0x5   :  { %s3059_s25 = smov 0   ;;  %s3061_s26 = smov 0  }
   0x6 LB: > { %s3076_s11 = sadd.s32 4294967295, %s2980_s26   ;;  %s2804_s27 = sadd.s32 4294967294, %s2980_s26   ;;  %s2980_s26 = sphi %s3061_s26, %s3961_s26   ;;  %s2976_s25 = sphi %s3059_s25, %s3960_s25   ;;  %s2972_s24 = sphi %s3057_s24, %s3959_s24   ;;  %s2968_s23 = sphi %s3055_s23, %s3958_s23  }
   0x7   : > { %s3080_s28 = sadd.s32 1, %s2980_s26   ;;  %s291_s29 = sadd.s32 1, %s2976_s25 }
   0x8   : > { %s288_s30 = ssub.s32 %s2980_s26, %s3080_s28  ;;  %p301_p0 = scmp.ne.s32.totalorder %s2976_s25, %s2972_s24 }
   0x9   : > { %p289_p1 = scmp.eq.s32.totalorder %s288_s30, 0  ;;  %p302_p2 = scmp.eq.s32.totalorder %s3076_s11, 1 }
   0xa   : > { %p307_p3 = scmp.ne.s32.totalorder %s2972_s24, %s2968_s23  ;;  %p308_p4 = scmp.eq.s32.totalorder %s2804_s27, 1 }
   0xb   : > { %s3091_s13 = scalar_select %p289_p1, %s2976_s25, %s291_s29  }
   0xc   : > { %p3093_p5 = por %p302_p2, %p301_p0  ;;  %p3097_p6 = por %p308_p4, %p307_p3 }
   0xd   : > { %p2807_p7 = scmp.ge.s32.totalorder %s2980_s26, 1  ;;  %p366_p8 = scmp.lt.s32.totalorder %s2980_s26, 3 }
   0xf   : > { %p367_p9 = pnand %p2807_p7, %p366_p8 }
  0x10   : > { %p406_p10 = scmp.lt.s32.totalorder (!%p367_p9), %s3076_s11, 1  ;;  %s3941_s0 = sld [smem:[#allocation6_spill]] (!%p367_p9) }
  0x11   : > { %370 = sbr.rel (%p367_p9) target bundleno = 1043 (0x413), region = 68  ;;  %s404_s17 = sand.u32 (!%p367_p9), 1, %s2972_s24  }
  0x12   : > { %s405_s21 = scalar_lea.vmem (!%p367_p9), [#allocation3], %s404_s17  ;;  %s2737_s29 = scalar_lea.sflag (!%p367_p9), [#allocation4], %s404_s17 }
  0x13   : > { %s2747_s22 = sshll.u32 (!%p367_p9), %s405_s21, 4  ;;  %s2938_s19 = scalar_lea.hbm (!%p367_p9), %s3937_s12, 2  ;;  %s2748_s22 = int_to_ptr.vmem [resolvable:$true] %s2747_s22 }
  0x16   : > { %v464_v1 = vlaneseq  ;;  %v411_v2 = vld [vmem:[%s3926_s1] sm:$0xff]  ;;  %vm474_vm0 = vcmask 130048   ;;  %v412_v3 = vld [vmem:[%s3926_s1 + $0x8] sm:$0xff]  ;;  %s407_s20 = scalar_select %p406_p10, %s3076_s11, 1  ;;  %v413_v9 = vld [vmem:[%s3926_s1 + $0x10] sm:$0xff]  ;;  %v2982_v22 = vmov 1.0  }
  0x17   : > { %v476_v4 = vsel %vm474_vm0, %v411_v2, 0  ;;  %v479_v5 = vsel %vm474_vm0, %v412_v3, 0  ;;  %v482_v13 = vsel %vm474_vm0, %v413_v9, 0  ;;  %v2983_v24 = vmov 0.0   ;;  %v414_v27 = vld [vmem:[%s3926_s1 + $0x18] sm:$0xff] }
  0x18   : > { %v3113_v6 = vshrl.u32 %v464_v1, 7  ;;  %v3115_v7 = vand.u32 4294901760, %v476_v4  ;;  %v3117_v8 = vand.u32 4294901760, %v479_v5  ;;  %s2808_s27 = sshll.u32 %s407_s20, 2  ;;  %v3143_v18 = vand.u32 4294901760, %v482_v13  ;;  %s2745_s20 = scalar_lea.hbm %s3937_s12, %s3076_s11 }
  0x19   : > { %s409_s16 = scalar_lea.vmem %s3941_s0, %s2808_s27  ;;  %v485_v35 = vsel %vm474_vm0, %v414_v27, 0  ;;  %v415_v50 = vld [vmem:[%s3926_s1 + $0x20] sm:$0x1]  ;;  %s2749_s27 = sshll.u32 %s2745_s20, 4  ;;  %s2750_s27 = int_to_ptr.hbm [resolvable:$true] %s2749_s27 }
  0x1a   : > { %v3123_v10 = vsub.f32 %v476_v4, %v3115_v7  ;;  %v3129_v11 = vadd.s32 8, %v3113_v6  ;;  %v3132_v12 = vsub.f32 %v479_v5, %v3117_v8  ;;  %v3135_v14 = vld [vmem:[%s409_s16] sm:$0xf]  ;;  %v3182_v30 = vsub.f32 %v482_v13, %v3143_v18  ;;  %s2932_s30 = sshra.s32 %s2750_s27, 4  ;;  %s2933_s30 = int_to_ptr.hbm [resolvable:$true] %s2932_s30 }
  0x1b   : > { %v467_v16 = vperm.slane %v3135_v14, 0  ;;  %v867_v31 = vperm.slane %v3135_v14, 1  ;;  %v3207_v42 = vand.u32 4294901760, %v485_v35  ;;  %v488_v56 = vsel %vm474_vm0, %v415_v50, 0  ;;  %s2934_s16 = scalar_lea.hbm %s2933_s30, 1  ;;  %p2939_p0 = scmp.lt.s32.totalorder %s2933_s30, %s3937_s12 }
  0x1c   : > { %v3138_v15 = vand.u32 4294901760, %v3123_v10  ;;  %v3156_v21 = vand.u32 4294901760, %v3132_v12  ;;  %v3205_v41 = vand.u32 4294901760, %v3182_v30  ;;  %v3241_v61 = vand.u32 4294901760, %v488_v56  ;;  %p2935_p11 = scmp.ne.s32.totalorder %s2933_s30, %s2934_s16  ;;  %p2940_p1 = scmp.lt.s32.totalorder %s2938_s19, %s2934_s16 }
  0x1d   : > { %vm3146_vm1 = vcmp.eq.s32.totalorder %v467_v16, %v3129_v11  ;;  %vm3151_vm2 = vcmp.eq.s32.totalorder %v467_v16, %v3113_v6  ;;  %vm3191_vm3 = vcmp.eq.s32.totalorder %v867_v31, %v3129_v11  ;;  %vm3199_vm4 = vcmp.eq.s32.totalorder %v867_v31, %v3113_v6 }
  0x1e   : > { %v511_v17 = vsub.f32 %v3123_v10, %v3138_v15  ;;  %2811 = vmatpush.msk.msra.mxu0 %vm3146_vm1, %v2982_v22  ;;  %v2810_v25 = vsel %vm3146_vm1, 1.0, %v2983_v24  ;;  %2813 = vmatpush.msk.msra.mxu3 %vm3146_vm1, %v2982_v22  ;;  %v2809_v26 = vsel %vm3151_vm2, 1.0, %v2983_v24  ;;  %v519_v33 = vsub.f32 %v3132_v12, %v3156_v21  ;;  %p2936_p12 = pnand %p2935_p11, %p3093_p5  ;;  %p2941_p2 = por %p2940_p1, %p2939_p0 }
  0x1f   : > { %v564_v28 = vsub.f32 %v2810_v25, %v2810_v25  ;;  %v570_v29 = vsub.f32 %v2809_v26, %v2809_v26  ;;  %v2818_v39 = vsel %vm3191_vm3, 1.0, %v2983_v24  ;;  %v2817_v44 = vsel %vm3199_vm4, 1.0, %v2983_v24 }
  0x20   : > { %v3161_v23 = vand.u32 4294901760, %v511_v17  ;;  %2812 = vmatpush.msk.msra.mxu0 %vm3151_vm2, %v2982_v22  ;;  %2814 = vmatpush.msk.msra.mxu3 %vm3151_vm2, %v2982_v22  ;;  %v948_v43 = vsub.f32 %v2818_v39, %v2818_v39  ;;  %v3212_v46 = vand.u32 4294901760, %v519_v33  ;;  %v954_v48 = vsub.f32 %v2817_v44, %v2817_v44  ;;  %v418_v33 = vld [vmem:[%s3927_s2 + $0x10] sm:$0xff]  ;;  %p2937_p13 = pneg %p2936_p12 }
  0x21   : > { %612 = vmatpush.msra.mxu2 %v564_v28  ;;  %v565_v32 = vand.u32 4294901760, %v564_v28  ;;  %v571_v34 = vand.u32 4294901760, %v570_v29  ;;  %663 = vmatmul.f32.vlgmr.msra.gmra.mxu3 %v3138_v15  ;;  %v527_v53 = vsub.f32 %v3182_v30, %v3205_v41  ;;  %v3227_v54 = vsub.f32 %v485_v35, %v3207_v42 }
  0x22   : > { %513 = vmatmul.f32.vlgmr.msra.gmra.mxu0 %v3161_v23  ;;  %v949_v49 = vand.u32 4294901760, %v948_v43  ;;  %v955_v51 = vand.u32 4294901760, %v954_v48  ;;  %v3259_v63 = vsub.f32 %v488_v56, %v3241_v61  ;;  %v1237_v4 = vperm.slane %v3135_v14, 2  ;;  %v443_v56 = vld [vmem:[%s3928_s3 + $0x18] sm:$0xff]  ;;  %p2942_p3 = pnand %p2941_p2, %p2937_p13 }
  0x23   : > { %615 = vmatpush.msra.mxu2 %v570_v29  ;;  %v566_v37 = vsub.f32 %v564_v28, %v565_v32  ;;  %v572_v38 = vsub.f32 %v570_v29, %v571_v34  ;;  %708 = vmatpush.msrb.mxu0 %v565_v32  ;;  %v3236_v59 = vand.u32 4294901760, %v527_v53  ;;  %v3239_v60 = vand.u32 4294901760, %v3227_v54 }
  0x24   : > { %618 = vmatmul.f32.vlgmr.msra.gmra.mxu2 %v3123_v10  ;;  %v950_v52 = vsub.f32 %v948_v43, %v949_v49  ;;  %v956_v55 = vsub.f32 %v954_v48, %v955_v51  ;;  %v3270_v1 = vand.u32 4294901760, %v3259_v63  ;;  %vm3310_vm5 = vcmp.eq.s32.totalorder %v1237_v4, %v3129_v11 }
  0x25   : > { %v567_v45 = vand.u32 4294901760, %v566_v37  ;;  %v573_v47 = vand.u32 4294901760, %v572_v38  ;;  %2819 = vmatpush.msk.msrb.mxu2 %vm3191_vm3, %v2982_v22  ;;  %712 = vmatpush.msrb.mxu0 %v571_v34  ;;  %v535_v62 = vsub.f32 %v3227_v54, %v3239_v60  ;;  %vm3315_vm6 = vcmp.eq.s32.totalorder %v1237_v4, %v3113_v6  ;;  %v416_v34 = vld [vmem:[%s3927_s2] sm:$0xff] }
  0x26   : > { %v951_v57 = vand.u32 4294901760, %v950_v52  ;;  %v957_v58 = vand.u32 4294901760, %v956_v55  ;;  %v543_v2 = vsub.f32 %v3259_v63, %v3270_v1  ;;  %v2826_v13 = vsel %vm3310_vm5, 1.0, %v2983_v24 }
  0x27   : > { %996 = vmatpush.msra.mxu0 %v948_v43  ;;  %568 = vmatpush.msra.mxu1 %v567_v45  ;;  %v3267_v0 = vand.u32 4294901760, %v535_v62  ;;  %v1318_v16 = vsub.f32 %v2826_v13, %v2826_v13  ;;  %v2825_v17 = vsel %vm3315_vm6, 1.0, %v2983_v24  ;;  %v1607_v31 = vperm.slane %v3135_v14, 3  ;;  %v440_v45 = vld [vmem:[%s3928_s3] sm:$0xff] }
  0x28   : > { %2820 = vmatpush.msk.msrb.mxu2 %vm3199_vm4, %v2982_v22  ;;  %952 = vmatpush.msrb.mxu3 %v951_v57  ;;  %v3278_v3 = vand.u32 4294901760, %v543_v2  ;;  %v1324_v20 = vsub.f32 %v2825_v17, %v2825_v17  ;;  %v442_v57 = vld [vmem:[%s3928_s3 + $0x10] sm:$0xff] }
  0x29   : > { %999 = vmatpush.msra.mxu0 %v954_v48  ;;  %574 = vmatpush.msra.mxu1 %v573_v47  ;;  %v1319_v19 = vand.u32 4294901760, %v1318_v16  ;;  %vm3362_vm7 = vcmp.eq.s32.totalorder %v1607_v31, %v3129_v11  ;;  %v2984_v11 = vmov 0   ;;  %vm3378_vm8 = vcmp.eq.s32.totalorder %v1607_v31, %v3113_v6  ;;  %v417_v47 = vld [vmem:[%s3927_s2 + $0x8] sm:$0xff] }
  0x2a   : > { %1092 = vmatpush.msra.mxu2 %v949_v49  ;;  %521 = vmatmul.f32.gmra.mxu0 %v3212_v46  ;;  %v1325_v26 = vand.u32 4294901760, %v1324_v20  ;;  %v2834_v14 = vsel %vm3362_vm7, 1.0, %v2983_v24  ;;  %v2833_v37 = vsel %vm3378_vm8, 1.0, %v2983_v24 }
  0x2b   : > { %576 = vmatmul.f32.vlgmr.msra.gmra.mxu1 %v3115_v7  ;;  %669 = vmatmul.f32.gmra.mxu3 %v3156_v21  ;;  %v1320_v25 = vsub.f32 %v1318_v16, %v1319_v19  ;;  %v1688_v35 = vsub.f32 %v2834_v14, %v2834_v14  ;;  %v1694_v39 = vsub.f32 %v2833_v37, %v2833_v37  ;;  %v419_v14 = vld [vmem:[%s3927_s2 + $0x18] sm:$0xff] }
  0x2c   : > { %2815 = vmatpush.msk.msrb.mxu1 %vm3146_vm1, %v2982_v22  ;;  %1096 = vmatpush.msra.mxu2 %v955_v51  ;;  %v1326_v28 = vsub.f32 %v1324_v20, %v1325_v26 }
  0x2d   : > { %623 = vmatmul.f32.gmra.mxu2 %v3132_v12  ;;  %958 = vmatpush.msrb.mxu3 %v957_v58  ;;  %v1321_v27 = vand.u32 4294901760, %v1320_v25  ;;  %v1689_v38 = vand.u32 4294901760, %v1688_v35  ;;  %v1695_v43 = vand.u32 4294901760, %v1694_v39 }
  0x2e   : > { %2816 = vmatpush.msk.msrb.mxu1 %vm3151_vm2, %v2982_v22  ;;  %v1327_v29 = vand.u32 4294901760, %v1326_v28  ;;  %2888 = vset.pattern.permute.xlu1 %v2984_v11 }
  0x2f   : > { %2823 = vmatpush.msk.msra.mxu3 %vm3191_vm3, %v2982_v22  ;;  %2887 = vset.pattern.permute.xlu0 %v2984_v11  ;;  %v1690_v6 = vsub.f32 %v1688_v35, %v1689_v38  ;;  %v1696_v44 = vsub.f32 %v1694_v39, %v1695_v43 }
  0x30   : > { %2821 = vmatpush.msk.msra.mxu1 %vm3191_vm3, %v2982_v22  ;;  %432 = vperm.xlu1 %2888, %v418_v33  }
  0x31   : > { %2824 = vmatpush.msk.msra.mxu3 %vm3199_vm4, %v2982_v22  ;;  %422 = vperm.xlu0 %2887, %v416_v34   ;;  %v1691_v24 = vand.u32 4294901760, %v1690_v6  ;;  %v1697_v48 = vand.u32 4294901760, %v1696_v44 }
  0x32   : > { %2822 = vmatpush.msk.msra.mxu1 %vm3199_vm4, %v2982_v22  ;;  %529 = vmatmul.f32.gmra.mxu0 %v3236_v59 }
  0x33   : > { %580 = vmatmul.f32.gmra.mxu1 %v3117_v8  ;;  %675 = vmatmul.f32.gmra.mxu3 %v3205_v41 }
  0x34   : > { %2889 = vset.pattern.permute.xlu2 %v2984_v11 }
  0x35   : > { %628 = vmatmul.f32.gmra.mxu2 %v3182_v30 }
  0x38   : > { %446 = vperm.xlu1 %2888, %v440_v45  }
  0x39   : > { %427 = vperm.xlu0 %2887, %v417_v47  }
  0x3a   : > { %537 = vmatmul.f32.gmra.mxu0 %v3267_v0 }
  0x3b   : > { %584 = vmatmul.f32.gmra.mxu1 %v3143_v18  ;;  %681 = vmatmul.f32.gmra.mxu3 %v3239_v60 }
  0x3d   : > { %633 = vmatmul.f32.gmra.mxu2 %v3227_v54 }
  0x40   : > { %461 = vperm.xlu1 %2888, %v443_v56  }
  0x41   : > { %456 = vperm.xlu0 %2887, %v442_v57  }
  0x42   : > { %545 = vmatmul.f32.gmra.mxu0 %v3278_v3 }
  0x43   : > { %588 = vmatmul.f32.gmra.mxu1 %v3207_v42  ;;  %687 = vmatmul.f32.gmra.mxu3 %v3270_v1 }
  0x45   : > { %638 = vmatmul.f32.gmra.mxu2 %v3259_v63 }
  0x4a   : > { %714 = vmatmul.f32.vlgmr.msrb.gmra.mxu0 %v3115_v7 }
  0x4b   : > { %592 = vmatmul.f32.gmra.mxu1 %v3241_v61  ;;  %960 = vmatmul.f32.vlgmr.msrb.gmra.mxu3 %v3115_v7 }
  0x4c   : > { %2827 = vmatpush.msk.msrb.mxu0 %vm3310_vm5, %v2982_v22  ;;  %2829 = vmatpush.msk.msrb.mxu3 %vm3310_vm5, %v2982_v22 }
  0x4d   : > { %897 = vmatmul.f32.vlgmr.msrb.gmra.mxu2 %v3161_v23 }
  0x4e   : > { %2828 = vmatpush.msk.msrb.mxu0 %vm3315_vm6, %v2982_v22  ;;  %2830 = vmatpush.msk.msrb.mxu3 %vm3315_vm6, %v2982_v22 }
  0x4f   : > { %1366 = vmatpush.msrb.mxu2 %v1318_v16 }
  0x51   : > { %1369 = vmatpush.msrb.mxu2 %v1324_v20 }
  0x52   : > { %718 = vmatmul.f32.gmra.mxu0 %v3117_v8 }
  0x53   : > { %753 = vmatmul.f32.vlgmr.msrb.gmra.mxu1 %v3115_v7  ;;  %964 = vmatmul.f32.gmra.mxu3 %v3117_v8 }
  0x54   : > { %1322 = vmatpush.msrb.mxu1 %v1321_v27 }
  0x55   : > { %905 = vmatmul.f32.gmra.mxu2 %v3212_v46 }
  0x56   : > { %1328 = vmatpush.msrb.mxu1 %v1327_v29 }
  0x5a   : > { %722 = vmatmul.f32.gmra.mxu0 %v3143_v18 }
  0x5b   : > { %757 = vmatmul.f32.gmra.mxu1 %v3117_v8  ;;  %968 = vmatmul.f32.gmra.mxu3 %v3143_v18 }
  0x5d   : > { %913 = vmatmul.f32.gmra.mxu2 %v3236_v59 }
  0x62   : > { %726 = vmatmul.f32.gmra.mxu0 %v3207_v42 }
  0x63   : > { %761 = vmatmul.f32.gmra.mxu1 %v3143_v18  ;;  %972 = vmatmul.f32.gmra.mxu3 %v3207_v42 }
  0x65   : > { %921 = vmatmul.f32.gmra.mxu2 %v3267_v0 }
  0x6a   : > { %730 = vmatmul.f32.gmra.mxu0 %v3241_v61 }
  0x6b   : > { %765 = vmatmul.f32.gmra.mxu1 %v3207_v42  ;;  %976 = vmatmul.f32.gmra.mxu3 %v3241_v61 }
  0x6d   : > { %929 = vmatmul.f32.gmra.mxu2 %v3278_v3 }
  0x72   : > { %1002 = vmatmul.f32.vlgmr.msra.gmra.mxu0 %v3123_v10 }
  0x73   : > { %769 = vmatmul.f32.gmra.mxu1 %v3241_v61  ;;  %1137 = vmatmul.f32.vlgmr.msra.gmra.mxu3 %v3115_v7 }
  0x74   : > { %1462 = vmatpush.msra.mxu0 %v1319_v19  ;;  %1692 = vmatpush.msra.mxu3 %v1691_v24 }
  0x75   : > { %1098 = vmatmul.f32.vlgmr.msra.gmra.mxu2 %v3115_v7 }
  0x76   : > { %1466 = vmatpush.msra.mxu0 %v1325_v26  ;;  %2835 = vmatpush.msk.msra.mxu2 %vm3362_vm7, %v2982_v22  ;;  %v441_v26 = vld [vmem:[%s3928_s3 + $0x8] sm:$0xff] }
  0x77   : > { %1698 = vmatpush.msra.mxu3 %v1697_v48  ;;  %451 = vperm.xlu2 %2889, %v441_v26  }
  0x78   : > { %2836 = vmatpush.msk.msra.mxu2 %vm3378_vm8, %v2982_v22 }
  0x7a   : > { %1007 = vmatmul.f32.gmra.mxu0 %v3132_v12 }
  0x7b   : > { %1047 = vmatmul.f32.vlgmr.msra.gmra.mxu1 %v3138_v15  ;;  %1141 = vmatmul.f32.gmra.mxu3 %v3117_v8 }
  0x7c   : > { %2831 = vmatpush.msk.msra.mxu1 %vm3310_vm5, %v2982_v22 }
  0x7d   : > { %1102 = vmatmul.f32.gmra.mxu2 %v3117_v8 }
  0x7e   : > { %2832 = vmatpush.msk.msra.mxu1 %vm3315_vm6, %v2982_v22 }
  0x7f   : > { %437 = vperm.xlu2 %2889, %v419_v14  }
  0x82   : > { %1012 = vmatmul.f32.gmra.mxu0 %v3182_v30 }
  0x83   : > { %1053 = vmatmul.f32.gmra.mxu1 %v3156_v21  ;;  %1145 = vmatmul.f32.gmra.mxu3 %v3143_v18 }
  0x85   : > { %1106 = vmatmul.f32.gmra.mxu2 %v3143_v18 }
  0x8a   : > { %1017 = vmatmul.f32.gmra.mxu0 %v3227_v54 }
  0x8b   : > { %1059 = vmatmul.f32.gmra.mxu1 %v3205_v41  ;;  %1149 = vmatmul.f32.gmra.mxu3 %v3207_v42 }
  0x8d   : > { %1110 = vmatmul.f32.gmra.mxu2 %v3207_v42 }
  0x92   : > { %1022 = vmatmul.f32.gmra.mxu0 %v3259_v63 }
  0x93   : > { %1065 = vmatmul.f32.gmra.mxu1 %v3239_v60  ;;  %1153 = vmatmul.f32.gmra.mxu3 %v3241_v61 }
  0x95   : > { %1114 = vmatmul.f32.gmra.mxu2 %v3241_v61 }
  0x9a   : > { %1267 = vmatmul.f32.vlgmr.msrb.gmra.mxu0 %v3161_v23 }
  0x9b   : > { %1071 = vmatmul.f32.gmra.mxu1 %v3270_v1  ;;  %1417 = vmatmul.f32.vlgmr.msrb.gmra.mxu3 %v3138_v15 }
  0x9c   : > { %1736 = vmatpush.msrb.mxu0 %v1688_v35  ;;  %2839 = vmatpush.msk.msrb.mxu3 %vm3362_vm7, %v2982_v22 }
  0x9d   : > { %1372 = vmatmul.f32.vlgmr.msrb.gmra.mxu2 %v3123_v10 }
  0x9e   : > { %1832 = vmatpush.msrb.mxu2 %v1689_v38  ;;  %1739 = vmatpush.msrb.mxu0 %v1694_v39 }
  0x9f   : > { %v514_v40 = vpop.f32.mrf.mxu0  ;;  %2840 = vmatpush.msk.msrb.mxu3 %vm3378_vm8, %v2982_v22 }
  0xa0   : > { %1836 = vmatpush.msrb.mxu2 %v1695_v43 }
  0xa2   : > { %1275 = vmatmul.f32.gmra.mxu0 %v3212_v46 }
  0xa3   : > { %1330 = vmatmul.f32.vlgmr.msrb.gmra.mxu1 %v3115_v7  ;;  %1423 = vmatmul.f32.gmra.mxu3 %v3156_v21 }
  0xa4   : > { %2837 = vmatpush.msk.msrb.mxu1 %vm3362_vm7, %v2982_v22  ;;  %v664_v49 = vpop.f32.mrf.mxu3 }
  0xa5   : > { %1377 = vmatmul.f32.gmra.mxu2 %v3132_v12 }
  0xa6   : > { %2838 = vmatpush.msk.msrb.mxu1 %vm3378_vm8, %v2982_v22 }
  0xa7   : > { %v522_v50 = vpop.f32.mrf.mxu0  ;;  %v619_v52 = vpop.f32.mrf.mxu2 }
  0xa8   : > { %v577_v51 = vpop.f32.mrf.mxu1 }
  0xa9   : > { %v578_v53 = vadd.f32 %v577_v51, %v514_v40 }
  0xaa   : > { %1283 = vmatmul.f32.gmra.mxu0 %v3236_v59 }
  0xab   : > { %v620_v55 = vadd.f32 %v619_v52, %v578_v53  ;;  %1334 = vmatmul.f32.gmra.mxu1 %v3117_v8  ;;  %1429 = vmatmul.f32.gmra.mxu3 %v3205_v41 }
  0xad   : > { %v665_v58 = vadd.f32 %v664_v49, %v620_v55  ;;  %1382 = vmatmul.f32.gmra.mxu2 %v3182_v30 }
  0xae   : > { %v670_v22 = vpop.f32.mrf.mxu3 }
  0xaf   : > { %v530_v62 = vpop.f32.mrf.mxu0 }
  0xb0   : > { %v581_v2 = vpop.f32.mrf.mxu1  ;;  %v624_v4 = vpop.f32.mrf.mxu2 }
  0xb1   : > { %v582_v5 = vadd.f32 %v581_v2, %v522_v50 }
  0xb2   : > { %1291 = vmatmul.f32.gmra.mxu0 %v3267_v0 }
  0xb3   : > { %v625_v9 = vadd.f32 %v624_v4, %v582_v5  ;;  %1338 = vmatmul.f32.gmra.mxu1 %v3143_v18  ;;  %1435 = vmatmul.f32.gmra.mxu3 %v3239_v60 }
  0xb5   : > { %v671_v13 = vadd.f32 %v670_v22, %v625_v9  ;;  %1387 = vmatmul.f32.gmra.mxu2 %v3227_v54 }
  0xb6   : > { %v676_v16 = vpop.f32.mrf.mxu3 }
  0xb7   : > { %v538_v17 = vpop.f32.mrf.mxu0 }
  0xb8   : > { %v585_v19 = vpop.f32.mrf.mxu1  ;;  %v629_v20 = vpop.f32.mrf.mxu2 }
  0xb9   : > { %v586_v25 = vadd.f32 %v585_v19, %v530_v62 }
  0xba   : > { %1299 = vmatmul.f32.gmra.mxu0 %v3278_v3 }
  0xbb   : > { %v630_v27 = vadd.f32 %v629_v20, %v586_v25  ;;  %1342 = vmatmul.f32.gmra.mxu1 %v3207_v42  ;;  %1441 = vmatmul.f32.gmra.mxu3 %v3270_v1 }
  0xbd   : > { %v677_v28 = vadd.f32 %v676_v16, %v630_v27  ;;  %1392 = vmatmul.f32.gmra.mxu2 %v3259_v63 }
  0xbe   : > { %v682_v29 = vpop.f32.mrf.mxu3 }
  0xbf   : > { %v546_v31 = vpop.f32.mrf.mxu0 }
  0xc0   : > { %v589_v32 = vpop.f32.mrf.mxu1  ;;  %v634_v33 = vpop.f32.mrf.mxu2 }
  0xc1   : > { %v590_v34 = vadd.f32 %v589_v32, %v538_v17 }
  0xc2   : > { %1468 = vmatmul.f32.vlgmr.msra.gmra.mxu0 %v3115_v7 }
  0xc3   : > { %v635_v11 = vadd.f32 %v634_v33, %v590_v34  ;;  %1346 = vmatmul.f32.gmra.mxu1 %v3241_v61  ;;  %1700 = vmatmul.f32.vlgmr.msra.gmra.mxu3 %v3115_v7 }
  0xc5   : > { %v683_v35 = vadd.f32 %v682_v29, %v635_v11  ;;  %1637 = vmatmul.f32.vlgmr.msra.gmra.mxu2 %v3161_v23 }
  0xc6   : > { %v688_v36 = vpop.f32.mrf.mxu3 }
  0xc7   : > { %v715_v37 = vpop.f32.mrf.mxu0 }
  0xc8   : > { %v593_v38 = vpop.f32.mrf.mxu1  ;;  %v639_v39 = vpop.f32.mrf.mxu2  ;;  %v716_v49 = vadd.f32 %v715_v37, %v665_v58 }
  0xc9   : > { %v594_v40 = vadd.f32 %v593_v38, %v546_v31 }
  0xca   : > { %1472 = vmatmul.f32.gmra.mxu0 %v3117_v8 }
  0xcb   : > { %v640_v6 = vadd.f32 %v639_v39, %v594_v40  ;;  %1507 = vmatmul.f32.vlgmr.msra.gmra.mxu1 %v3115_v7  ;;  %1704 = vmatmul.f32.gmra.mxu3 %v3117_v8 }
  0xcd   : > { %v3445_v43 = vadd.f32 %v688_v36, %v640_v6  ;;  %1645 = vmatmul.f32.gmra.mxu2 %v3212_v46 }
  0xce   : > { %v961_v24 = vpop.f32.mrf.mxu3 }
  0xcf   : > { %v719_v44 = vpop.f32.mrf.mxu0 }
  0xd0   : > { %v754_v45 = vpop.f32.mrf.mxu1  ;;  %v898_v23 = vpop.f32.mrf.mxu2  ;;  %v720_v50 = vadd.f32 %v719_v44, %v671_v13 }
  0xd1   : > { %v3448_v47 = vadd.f32 %v961_v24, %v898_v23  ;;  %v755_v53 = vadd.f32 %v754_v45, %v716_v49 }
  0xd2   : > { %1476 = vmatmul.f32.gmra.mxu0 %v3143_v18 }
  0xd3   : > { %1511 = vmatmul.f32.gmra.mxu1 %v3117_v8  ;;  %1708 = vmatmul.f32.gmra.mxu3 %v3143_v18 }
  0xd5   : > { %1653 = vmatmul.f32.gmra.mxu2 %v3236_v59  ;;  %v2985_v59 = vmov 32.0  }
  0xd6   : > { %v3454_v48 = vpop.f32.mrf.mxu3  ;;  %2890 = vrcp.f32 %v2985_v59 }
  0xd7   : > { %v723_v51 = vpop.f32.mrf.mxu0 }
  0xd8   : > { %v758_v46 = vpop.f32.mrf.mxu1  ;;  %v3456_v52 = vpop.f32.mrf.mxu2  ;;  %v724_v58 = vadd.f32 %v723_v51, %v677_v28 }
  0xd9   : > { %v759_v55 = vadd.f32 %v758_v46, %v720_v50 }
  0xda   : > { %1480 = vmatmul.f32.gmra.mxu0 %v3207_v42 }
  0xdb   : > { %v774_v56 = vadd.f32 %v759_v55, %v755_v53  ;;  %1515 = vmatmul.f32.gmra.mxu1 %v3143_v18  ;;  %1712 = vmatmul.f32.gmra.mxu3 %v3207_v42 }
  0xdc   : > { %v2891_v5 = vpop.eup %2890 }
  0xdd   : > { %1661 = vmatmul.f32.gmra.mxu2 %v3267_v0  ;;  %v784_v0 = vmul.f32 32.0, %v2891_v5  ;;  %vm788_vm9 = vweird.f32 %v2891_v5 }
  0xde   : > { %v3462_v57 = vpop.f32.mrf.mxu3 }
  0xdf   : > { %v727_v22 = vpop.f32.mrf.mxu0  ;;  %v785_v26 = vsub.f32 1.0, %v784_v0 }
  0xe0   : > { %v762_v62 = vpop.f32.mrf.mxu1  ;;  %v3464_v2 = vpop.f32.mrf.mxu2  ;;  %v728_v16 = vadd.f32 %v727_v22, %v683_v35  ;;  %v2986_v35 = vmov 31.0  }
  0xe1   : > { %v763_v4 = vadd.f32 %v762_v62, %v724_v58  ;;  %2892 = vrcp.f32 %v2986_v35 }
  0xe2   : > { %1484 = vmatmul.f32.gmra.mxu0 %v3241_v61 }
  0xe3   : > { %v775_v9 = vadd.f32 %v774_v56, %v763_v4  ;;  %1519 = vmatmul.f32.gmra.mxu1 %v3207_v42  ;;  %1716 = vmatmul.f32.gmra.mxu3 %v3241_v61 }
  0xe5   : > { %1669 = vmatmul.f32.gmra.mxu2 %v3278_v3  ;;  %v786_v3 = vmul.f32 %v2891_v5, %v785_v26 }
  0xe6   : > { %v3470_v13 = vpop.f32.mrf.mxu3 }
  0xe7   : > { %v3472_v17 = vpop.f32.mrf.mxu0  ;;  %v787_v11 = vadd.f32 %v2891_v5, %v786_v3 }
  0xe8   : > { %v766_v19 = vpop.f32.mrf.mxu1  ;;  %v3474_v20 = vpop.f32.mrf.mxu2 }
  0xe9   : > { %v767_v25 = vadd.f32 %v766_v19, %v728_v16  ;;  %v3490_v36 = vsel %vm788_vm9, %v2891_v5, %v787_v11 }
  0xea   : > { %1742 = vmatmul.f32.vlgmr.msrb.gmra.mxu0 %v3123_v10 }
  0xeb   : > { %v776_v27 = vadd.f32 %v775_v9, %v767_v25  ;;  %1523 = vmatmul.f32.gmra.mxu1 %v3241_v61  ;;  %1877 = vmatmul.f32.vlgmr.msrb.gmra.mxu3 %v3115_v7 }
  0xed   : > { %v777_v28 = vrot.slane %v776_v27, 4  ;;  %1838 = vmatmul.f32.vlgmr.msrb.gmra.mxu2 %v3115_v7 }
  0xee   : > { %v3480_v29 = vpop.f32.mrf.mxu3 }
  0xef   : > { %v778_v31 = vadd.f32 %v777_v28, %v776_v27  ;;  %v1003_v32 = vpop.f32.mrf.mxu0 }
  0xf0   : > { %v3482_v33 = vpop.f32.mrf.mxu1  ;;  %v3484_v34 = vpop.f32.mrf.mxu2 }
  0xf1   : > { %v779_v14 = vrot.slane %v778_v31, 2 }
  0xf2   : > { %1747 = vmatmul.f32.gmra.mxu0 %v3132_v12 }
  0xf3   : > { %v780_v10 = vadd.f32 %v779_v14, %v778_v31  ;;  %1787 = vmatmul.f32.vlgmr.msrb.gmra.mxu1 %v3138_v15  ;;  %1881 = vmatmul.f32.gmra.mxu3 %v3117_v8  ;;  %v2893_v15 = vpop.eup %2892 }
  0xf4   : > { %vm813_vm10 = vweird.f32 %v2893_v15 }
  0xf5   : > { %v781_v7 = vrot.slane %v780_v10, 1  ;;  %1842 = vmatmul.f32.gmra.mxu2 %v3117_v8 }
  0xf6   : > { %v3492_v37 = vpop.f32.mrf.mxu3 }
  0xf7   : > { %v782_v38 = vadd.f32 %v781_v7, %v780_v10  ;;  %v1008_v39 = vpop.f32.mrf.mxu0 }
  0xf8   : > { %v1048_v40 = vpop.f32.mrf.mxu1  ;;  %v1099_v6 = vpop.f32.mrf.mxu2 }
  0xf9   : > { %v790_v12 = vmul.f32 %v3490_v36, %v782_v38 }
  0xfa   : > { %1752 = vmatmul.f32.gmra.mxu0 %v3182_v30  ;;  %v809_v30 = vmul.f32 31.0, %v2893_v15 }
  0xfb   : > { %v3496_v24 = vsub.f32 %v755_v53, %v790_v12  ;;  %v3498_v44 = vsub.f32 %v759_v55, %v790_v12  ;;  %v3500_v45 = vsub.f32 %v763_v4, %v790_v12  ;;  %v3502_v8 = vsub.f32 %v767_v25, %v790_v12  ;;  %1793 = vmatmul.f32.gmra.mxu1 %v3156_v21 }
  0xfc   : > { %1885 = vmatmul.f32.gmra.mxu3 %v3143_v18  ;;  %v810_v58 = vsub.f32 1.0, %v809_v30  ;;  %v970_v4 = vadd.f32 %v3462_v57, %v3464_v2 }
  0xfd   : > { %v795_v23 = vmul.f32 %v3496_v24, %v3496_v24  ;;  %v796_v49 = vmul.f32 %v3498_v44, %v3498_v44  ;;  %1846 = vmatmul.f32.gmra.mxu2 %v3143_v18  ;;  %v797_v51 = vmul.f32 %v3500_v45, %v3500_v45  ;;  %v798_v21 = vmul.f32 %v3502_v8, %v3502_v8 }
  0xfe   : > { %v1142_v50 = vpop.f32.mrf.mxu3  ;;  %v966_v18 = vadd.f32 %v3454_v48, %v3456_v52  ;;  %v811_v5 = vmul.f32 %v2893_v15, %v810_v58  ;;  %v732_v58 = vadd.f32 %v3472_v17, %v3445_v43  ;;  %v1993_v43 = vld [vmem:[%s3930_s5] sm:$0xff] }
  0xff   : > { %v799_v46 = vadd.f32 %v796_v49, %v795_v23  ;;  %v1013_v53 = vpop.f32.mrf.mxu0  ;;  %v978_v23 = vadd.f32 %v3480_v29, %v3484_v34  ;;  %v1989_v29 = vld [vmem:[%s3929_s4] sm:$0xff] }
 0x100   : > { %v1054_v55 = vpop.f32.mrf.mxu1  ;;  %v1103_v56 = vpop.f32.mrf.mxu2  ;;  %v1009_v9 = vadd.f32 %v1008_v39, %v966_v18  ;;  %v1014_v25 = vadd.f32 %v1013_v53, %v970_v4  ;;  %v812_v52 = vadd.f32 %v2893_v15, %v811_v5  ;;  %v771_v4 = vadd.f32 %v3482_v33, %v732_v58  ;;  %v2108_v33 = vld [vmem:[%s3934_s9] sm:$0xff]  ;;  %v2430_v58 = vld [vmem:[%s3932_s7 + $0x18] sm:$0xff] }
 0x101   : > { %v800_v59 = vadd.f32 %v799_v46, %v797_v51 }
 0x102   : > { %1757 = vmatmul.f32.gmra.mxu0 %v3227_v54  ;;  %v1004_v54 = vadd.f32 %v1003_v32, %v3448_v47  ;;  %v974_v47 = vadd.f32 %v3470_v13, %v3474_v20  ;;  %v3530_v31 = vsel %vm813_vm10, %v2893_v15, %v812_v52  ;;  %v1996_v20 = vld [vmem:[%s3930_s5 + $0x18] sm:$0xff] }
 0x103   : > { %v801_v22 = vadd.f32 %v800_v59, %v798_v21  ;;  %1799 = vmatmul.f32.gmra.mxu1 %v3205_v41  ;;  %v1055_v41 = vadd.f32 %v1054_v55, %v1009_v9  ;;  %2097 = vperm.xlu1 %2888, %v1996_v20  }
 0x104   : > { %1889 = vmatmul.f32.gmra.mxu3 %v3207_v42  ;;  %v1049_v28 = vadd.f32 %v1048_v40, %v1004_v54 }
 0x105   : > { %v802_v62 = vrot.slane %v801_v22, 4  ;;  %1850 = vmatmul.f32.gmra.mxu2 %v3207_v42  ;;  %v1104_v57 = vadd.f32 %v1103_v56, %v1055_v41 }
 0x106   : > { %v1146_v0 = vpop.f32.mrf.mxu3  ;;  %v1100_v32 = vadd.f32 %v1099_v6, %v1049_v28 }
 0x107   : > { %v803_v16 = vadd.f32 %v802_v62, %v801_v22  ;;  %v1018_v19 = vpop.f32.mrf.mxu0  ;;  %v3535_v35 = vadd.f32 %v1142_v50, %v1104_v57 }
 0x108   : > { %v1060_v26 = vpop.f32.mrf.mxu1  ;;  %v1107_v27 = vpop.f32.mrf.mxu2  ;;  %v1139_v40 = vadd.f32 %v3492_v37, %v1100_v32  ;;  %v1995_v37 = vld [vmem:[%s3930_s5 + $0x10] sm:$0xff] }
 0x109   : > { %v804_v48 = vrot.slane %v803_v16, 2  ;;  %v1061_v3 = vadd.f32 %v1060_v26, %v1014_v25 }
 0x10a   : > { %1762 = vmatmul.f32.gmra.mxu0 %v3259_v63  ;;  %v1019_v63 = vadd.f32 %v1018_v19, %v974_v47  ;;  %v1158_v12 = vadd.f32 %v3535_v35, %v1139_v40 }
 0x10b   : > { %v805_v42 = vadd.f32 %v804_v48, %v803_v16  ;;  %1805 = vmatmul.f32.gmra.mxu1 %v3239_v60  ;;  %v1108_v14 = vadd.f32 %v1107_v27, %v1061_v3  ;;  %v1991_v60 = vld [vmem:[%s3929_s4 + $0x10] sm:$0xff]  ;;  %2058 = vperm.xlu1 %2888, %v1989_v29  }
 0x10c   : > { %1893 = vmatmul.f32.gmra.mxu3 %v3241_v61  ;;  %2068 = vperm.xlu0 %2887, %v1991_v60  }
 0x10d   : > { %v806_v2 = vrot.slane %v805_v42, 1  ;;  %1854 = vmatmul.f32.gmra.mxu2 %v3241_v61  ;;  %v3542_v6 = vadd.f32 %v1146_v0, %v1108_v14 }
 0x10e   : > { %v1150_v11 = vpop.f32.mrf.mxu3 }
 0x10f   : > { %v807_v10 = vadd.f32 %v806_v2, %v805_v42  ;;  %v1023_v7 = vpop.f32.mrf.mxu0  ;;  %v1159_v49 = vadd.f32 %v1158_v12, %v3542_v6 }
 0x110   : > { %v1066_v38 = vpop.f32.mrf.mxu1  ;;  %v1111_v39 = vpop.f32.mrf.mxu2  ;;  %v1024_v51 = vadd.f32 %v1023_v7, %v978_v23 }
 0x111   : > { %v815_v13 = vmul.f32 %v3530_v31, %v807_v10  ;;  %v1067_v61 = vadd.f32 %v1066_v38, %v1019_v63 }
 0x113   : > { %2894 = vrsqrt.f32 %v815_v13  ;;  %1811 = vmatmul.f32.gmra.mxu1 %v3270_v1  ;;  %v1112_v15 = vadd.f32 %v1111_v39, %v1067_v61  ;;  %2114 = vperm.xlu1 %2888, %v2108_v33   ;;  %vm823_vm11 = vcmp.eq.f32.partialorder %v815_v13, inf  ;;  %v826_v57 = vand.u32 2147483648, %v815_v13  ;;  %v2110_v61 = vld [vmem:[%s3934_s9 + $0x10] sm:$0xff] }
 0x114   : > { %2092 = vperm.xlu0 %2887, %v1995_v37   ;;  %vm825_vm12 = vcmp.eq.f32.partialorder %v815_v13, 0.0 }
 0x115   : > { %v1151_v30 = vadd.f32 %v1150_v11, %v1112_v15 }
 0x116   : > { %v1154_v50 = vpop.f32.mrf.mxu3 }
 0x117   : > { %v1268_v46 = vpop.f32.mrf.mxu0  ;;  %v1160_v53 = vadd.f32 %v1159_v49, %v1151_v30 }
 0x118   : > { %v1072_v55 = vpop.f32.mrf.mxu1  ;;  %v1115_v56 = vpop.f32.mrf.mxu2 }
 0x119   : > { %v2895_v1 = vpop.eup %2894  ;;  %v1073_v21 = vadd.f32 %v1072_v55, %v1024_v51  ;;  %v1161_v59 = vrot.slane %v1160_v53, 4 }
 0x11a   : > { %v817_v34 = vmul.f32 %v2895_v1, %v815_v13 }
 0x11b   : > { %v1116_v22 = vadd.f32 %v1115_v56, %v1073_v21  ;;  %v1162_v62 = vadd.f32 %v1161_v59, %v1160_v53  ;;  %v2425_v21 = vld [vmem:[%s3931_s6 + $0x10] sm:$0xff] }
 0x11c   : > { %v818_v18 = vmul.f32 %v2895_v1, %v817_v34  ;;  %2082 = vperm.xlu0 %2887, %v1993_v43  }
 0x11d   : > { %v1155_v5 = vadd.f32 %v1154_v50, %v1116_v22  ;;  %v1163_v0 = vrot.slane %v1162_v62, 2 }
 0x11e   : > { %v819_v9 = vmul.f32 0.5, %v818_v18  ;;  %v1418_v16 = vpop.f32.mrf.mxu3 }
 0x11f   : > { %v3558_v19 = vadd.f32 %v1155_v5, %v771_v4  ;;  %v1276_v54 = vpop.f32.mrf.mxu0  ;;  %v1164_v41 = vadd.f32 %v1163_v0, %v1162_v62 }
 0x120   : > { %v820_v25 = vsub.f32 1.5, %v819_v9  ;;  %v1331_v26 = vpop.f32.mrf.mxu1  ;;  %v1373_v27 = vpop.f32.mrf.mxu2 }
 0x121   : > { %v1332_v17 = vadd.f32 %v1331_v26, %v1268_v46  ;;  %v1165_v52 = vrot.slane %v1164_v41, 1 }
 0x122   : > { %v821_v48 = vmul.f32 %v2895_v1, %v820_v25  ;;  %v1992_v1 = vld [vmem:[%s3929_s4 + $0x18] sm:$0xff] }
 0x123   : > { %v1374_v28 = vadd.f32 %v1373_v27, %v1332_v17  ;;  %v1166_v42 = vadd.f32 %v1165_v52, %v1164_v41  ;;  %2073 = vperm.xlu2 %2889, %v1992_v1   ;;  %v2429_v52 = vld [vmem:[%s3932_s7 + $0x10] sm:$0xff] }
 0x124   : > { %v822_v3 = vmul.f32 %v821_v48, %v815_v13  ;;  %2124 = vperm.xlu0 %2887, %v2110_v61   ;;  %v1990_v48 = vld [vmem:[%s3929_s4 + $0x8] sm:$0xff] }
 0x125   : > { %v3566_v2 = vadd.f32 %v1418_v16, %v1374_v28  ;;  %v1167_v32 = vmul.f32 %v1166_v42, %v3490_v36 }
 0x126   : > { %v824_v47 = vsel %vm823_vm11, %v815_v13, %v822_v3  ;;  %v1424_v14 = vpop.f32.mrf.mxu3 }
 0x127   : > { %v827_v11 = vsel %vm825_vm12, %v826_v57, %v824_v47  ;;  %v1284_v10 = vpop.f32.mrf.mxu0  ;;  %v3569_v7 = vsub.f32 %v1139_v40, %v1167_v32  ;;  %v3572_v60 = vsub.f32 %v3535_v35, %v1167_v32  ;;  %v3578_v20 = vsub.f32 %v3542_v6, %v1167_v32  ;;  %v2111_v40 = vld [vmem:[%s3934_s9 + $0x18] sm:$0xff]  ;;  %v2423_v57 = vld [vmem:[%s3931_s6] sm:$0xff] }
 0x128   : > { %v828_v63 = vadd.f32 1e-06, %v827_v11  ;;  %v1335_v38 = vpop.f32.mrf.mxu1  ;;  %v1378_v39 = vpop.f32.mrf.mxu2  ;;  %v3580_v13 = vsub.f32 %v1151_v30, %v1167_v32  ;;  %2129 = vperm.xlu1 %2888, %v2111_v40  }
 0x129   : > { %v1336_v12 = vadd.f32 %v1335_v38, %v1276_v54  ;;  %v1172_v35 = vmul.f32 %v3569_v7, %v3569_v7  ;;  %v1173_v15 = vmul.f32 %v3572_v60, %v3572_v60  ;;  %v1174_v6 = vmul.f32 %v3578_v20, %v3578_v20 }
 0x12a   : > { %2896 = vrcp.f32 %v828_v63  ;;  %v1175_v51 = vmul.f32 %v3580_v13, %v3580_v13  ;;  %v838_v4 = vand.u32 2147483647, %v828_v63  ;;  %v840_v5 = vand.u32 2147483648, %v828_v63 }
 0x12b   : > { %v1379_v23 = vadd.f32 %v1378_v39, %v1336_v12  ;;  %v1176_v49 = vadd.f32 %v1173_v15, %v1172_v35  ;;  %vm834_vm14 = vweird.f32 %v828_v63  ;;  %2063 = vperm.xlu2 %2889, %v1990_v48  }
 0x12c   : > { %2502 = vperm.xlu0 %2887, %v2425_v21   ;;  %v841_v27 = vor.u32 1.1754944e-38, %v840_v5  ;;  %vm839_vm0 = vcmp.eq.f32.partialorder %v838_v4, 8.507059e+37  ;;  %v2426_v4 = vld [vmem:[%s3931_s6 + $0x18] sm:$0xff]  ;;  %v3652_v5 = vpop.permute.xlu1 %432 }
 0x12d   : > { %v3591_v30 = vadd.f32 %v1424_v14, %v1379_v23  ;;  %v1177_v46 = vadd.f32 %v1176_v49, %v1174_v6 }
 0x12e   : > { %v1430_v50 = vpop.f32.mrf.mxu3 }
 0x12f   : > { %v1292_v37 = vpop.f32.mrf.mxu0  ;;  %v1178_v34 = vadd.f32 %v1177_v46, %v1175_v51 }
 0x130   : > { %v2897_v53 = vpop.eup %2896  ;;  %v1339_v55 = vpop.f32.mrf.mxu1  ;;  %2531 = vperm.xlu1 %2888, %v2430_v58  }
 0x131   : > { %v1383_v56 = vpop.f32.mrf.mxu2  ;;  %v830_v29 = vmul.f32 %v2897_v53, %v828_v63  ;;  %v1340_v59 = vadd.f32 %v1339_v55, %v1284_v10  ;;  %v1179_v18 = vrot.slane %v1178_v34, 4  ;;  %vm835_vm13 = vweird.f32 %v2897_v53  ;;  %v2109_v55 = vld [vmem:[%s3934_s9 + $0x8] sm:$0xff] }
 0x132   : > { %vm836_vm15 = vmor %vm834_vm14, %vm835_vm13 }
 0x133   : > { %v831_v22 = vsub.f32 1.0, %v830_v29  ;;  %v1384_v62 = vadd.f32 %v1383_v56, %v1340_v59  ;;  %v1180_v0 = vadd.f32 %v1179_v18, %v1178_v34 }
 0x134   : > { %2526 = vperm.xlu0 %2887, %v2429_v52  }
 0x135   : > { %v832_v9 = vmul.f32 %v2897_v53, %v831_v22  ;;  %v3604_v16 = vadd.f32 %v1430_v50, %v1384_v62  ;;  %v1181_v41 = vrot.slane %v1180_v0, 2 }
 0x136   : > { %v1436_v54 = vpop.f32.mrf.mxu3 }
 0x137   : > { %v833_v25 = vadd.f32 %v2897_v53, %v832_v9  ;;  %v1300_v26 = vpop.f32.mrf.mxu0  ;;  %v1182_v28 = vadd.f32 %v1181_v41, %v1180_v0  ;;  %v3654_v9 = vpop.permute.xlu0 %422 }
 0x138   : > { %v1343_v43 = vpop.f32.mrf.mxu1  ;;  %2492 = vperm.xlu1 %2888, %v2423_v57   ;;  %v3674_v57 = vpop.permute.xlu1 %446 }
 0x139   : > { %v1388_v17 = vpop.f32.mrf.mxu2  ;;  %v837_v33 = vsel %vm836_vm15, %v2897_v53, %v833_v25  ;;  %v1344_v3 = vadd.f32 %v1343_v43, %v1292_v37  ;;  %v1183_v32 = vrot.slane %v1182_v28, 1 }
 0x13a   : > { %v842_v42 = vsel %vm839_vm0, %v841_v27, %v837_v33 }
 0x13b   : > { %v3616_v47 = vmul.f32 %v842_v42, %v3502_v8  ;;  %v3619_v14 = vmul.f32 %v842_v42, %v3500_v45  ;;  %v3622_v11 = vmul.f32 %v842_v42, %v3496_v24  ;;  %v3625_v10 = vmul.f32 %v842_v42, %v3498_v44  ;;  %v1994_v45 = vld [vmem:[%s3930_s5 + $0x8] sm:$0xff]  ;;  %v2427_v24 = vld [vmem:[%s3932_s7] sm:$0xff] }
 0x13c   : > { %v1389_v63 = vadd.f32 %v1388_v17, %v1344_v3  ;;  %v1184_v38 = vadd.f32 %v1183_v32, %v1182_v28  ;;  %2087 = vperm.xlu2 %2889, %v1994_v45   ;;  %2516 = vperm.xlu0 %2887, %v2427_v24   ;;  %v2727_v44 = vld [vmem:[#allocation2] sm:$0x1]  ;;  %v3664_v17 = vpop.permute.xlu2 %451  ;;  %v2424_v3 = vld [vmem:[%s3931_s6 + $0x8] sm:$0xff] }
 0x13d   : > { %v2428_v24 = vld [vmem:[%s3932_s7 + $0x8] sm:$0xff] }
 0x13e   : > { %v3627_v39 = vadd.f32 %v1436_v54, %v1389_v63  ;;  %v1442_v61 = vpop.f32.mrf.mxu3  ;;  %v1185_v12 = vmul.f32 %v1184_v38, %v3530_v31 }
 0x13f   : > { %v1469_v8 = vpop.f32.mrf.mxu0  ;;  %v3676_v32 = vpop.permute.xlu0 %427 }
 0x140   : > { %v1347_v40 = vpop.f32.mrf.mxu1  ;;  %2898 = vrsqrt.f32 %v1185_v12  ;;  %2730 = vperm.xlu1 %2888, %v2727_v44   ;;  %v1470_v34 = vadd.f32 %v1469_v8, %v3566_v2  ;;  %vm1193_vm1 = vcmp.eq.f32.partialorder %v1185_v12, inf  ;;  %vm1195_vm2 = vcmp.eq.f32.partialorder %v1185_v12, 0.0 }
 0x141   : > { %v1393_v35 = vpop.f32.mrf.mxu2  ;;  %v1348_v15 = vadd.f32 %v1347_v40, %v1300_v26 }
 0x143   : > { %v1394_v23 = vadd.f32 %v1393_v35, %v1348_v15 }
 0x144   : > { %2119 = vperm.xlu2 %2889, %v2109_v55   ;;  %v3687_v15 = vpop.permute.xlu2 %437 }
 0x145   : > { %v1443_v50 = vadd.f32 %v1442_v61, %v1394_v23  ;;  %v850_v55 = vmul.f32 %v3616_v47, %v3687_v15 }
 0x146   : > { %v3636_v6 = vpop.f32.mrf.mxu3  ;;  %v2899_v49 = vpop.eup %2898 }
 0x147   : > { %v1473_v51 = vpop.f32.mrf.mxu0  ;;  %v1187_v46 = vmul.f32 %v2899_v49, %v1185_v12 }
 0x148   : > { %v1508_v37 = vpop.f32.mrf.mxu1  ;;  %v1474_v59 = vadd.f32 %v1473_v51, %v3591_v30  ;;  %v1196_v30 = vand.u32 2147483648, %v1185_v12 }
 0x149   : > { %v3638_v53 = vpop.f32.mrf.mxu2  ;;  %v1188_v56 = vmul.f32 %v2899_v49, %v1187_v46  ;;  %v3656_v0 = vadd.f32 %v1508_v37, %v1470_v34  ;;  %v847_v37 = vmul.f32 %v3622_v11, %v3654_v9 }
 0x14b   : > { %v1189_v1 = vmul.f32 0.5, %v1188_v56  ;;  %v851_v47 = vadd.f32 %v847_v37, %v3674_v57 }
 0x14c   : > { %2507 = vperm.xlu2 %2889, %v2426_v4  }
 0x14d   : > { %v1190_v21 = vsub.f32 1.5, %v1189_v1  ;;  %v3698_v1 = vpop.permute.xlu1 %461 }
 0x14e   : > { %v3643_v29 = vpop.f32.mrf.mxu3 }
 0x14f   : > { %v1477_v58 = vpop.f32.mrf.mxu0  ;;  %v1191_v22 = vmul.f32 %v2899_v49, %v1190_v21  ;;  %v3700_v21 = vpop.permute.xlu0 %456 }
 0x150   : > { %v1512_v18 = vpop.f32.mrf.mxu1  ;;  %v1478_v48 = vadd.f32 %v1477_v58, %v3604_v16  ;;  %v848_v58 = vmul.f32 %v3625_v10, %v3676_v32 }
 0x151   : > { %v3647_v62 = vpop.f32.mrf.mxu2  ;;  %v3658_v54 = vadd.f32 %v1512_v18, %v1474_v59  ;;  %v1192_v2 = vmul.f32 %v1191_v22, %v1185_v12 }
 0x153   : > { %v1528_v25 = vadd.f32 %v3658_v54, %v3656_v0  ;;  %v1194_v41 = vsel %vm1193_vm1, %v1185_v12, %v1192_v2  ;;  %v854_v2 = vadd.f32 %v850_v55, %v3698_v1 }
 0x154   : > { %v1197_v26 = vsel %vm1195_vm2, %v1196_v30, %v1194_v41  ;;  %2497 = vperm.xlu2 %2889, %v2424_v3  }
 0x155   : > { %v1198_v27 = vadd.f32 1e-06, %v1197_v26 }
 0x156   : > { %v3662_v43 = vpop.f32.mrf.mxu3 }
 0x157   : > { %v1481_v52 = vpop.f32.mrf.mxu0  ;;  %2900 = vrcp.f32 %v1198_v27  ;;  %v1210_v49 = vand.u32 2147483648, %v1198_v27  ;;  %v1208_v46 = vand.u32 2147483647, %v1198_v27  ;;  %vm1204_vm4 = vweird.f32 %v1198_v27 }
 0x158   : > { %v1516_v33 = vpop.f32.mrf.mxu1  ;;  %v1482_v12 = vadd.f32 %v1481_v52, %v3627_v39  ;;  %v852_v52 = vadd.f32 %v848_v58, %v3664_v17 }
 0x159   : > { %v3667_v28 = vpop.f32.mrf.mxu2  ;;  %v3672_v42 = vadd.f32 %v1516_v33, %v1478_v48  ;;  %v1211_v59 = vor.u32 1.1754944e-38, %v1210_v49  ;;  %vm1209_vm6 = vcmp.eq.f32.partialorder %v1208_v46, 8.507059e+37  ;;  %v862_v49 = vmul.f32 %v854_v2, %v854_v2 }
 0x15b   : > { %v1529_v63 = vadd.f32 %v1528_v25, %v3672_v42 }
 0x15c   : > { %2521 = vperm.xlu2 %2889, %v2428_v24  }
 0x15d   : > { %v2901_v38 = vpop.eup %2900 }
 0x15e   : > { %v3679_v16 = vpop.f32.mrf.mxu3  ;;  %v1200_v61 = vmul.f32 %v2901_v38, %v1198_v27  ;;  %vm1205_vm3 = vweird.f32 %v2901_v38 }
 0x15f   : > { %v1485_v8 = vpop.f32.mrf.mxu0  ;;  %vm1206_vm5 = vmor %vm1204_vm4, %vm1205_vm3 }
 0x160   : > { %v1486_v40 = vadd.f32 %v1485_v8, %v1443_v50  ;;  %v1520_v35 = vpop.f32.mrf.mxu1  ;;  %v1201_v44 = vsub.f32 1.0, %v1200_v61  ;;  %v849_v50 = vmul.f32 %v3619_v14, %v3652_v5  ;;  %v859_v8 = vmul.f32 %v851_v47, %v851_v47 }
 0x161   : > { %v3682_v45 = vpop.f32.mrf.mxu2  ;;  %v3689_v23 = vadd.f32 %v1520_v35, %v1482_v12 }
 0x162   : > { %v1202_v51 = vmul.f32 %v2901_v38, %v1201_v44  ;;  %v853_v30 = vadd.f32 %v849_v50, %v3700_v21  ;;  %v860_v44 = vmul.f32 %v852_v52, %v852_v52 }
 0x163   : > { %v1530_v39 = vadd.f32 %v1529_v63, %v3689_v23 }
 0x164   : > { %v1203_v56 = vadd.f32 %v2901_v38, %v1202_v51  ;;  %v861_v51 = vmul.f32 %v853_v30, %v853_v30 }
 0x165   : > { %v1531_v34 = vrot.slane %v1530_v39, 4 }
 0x166   : > { %v1717_v22 = vpop.f32.mrf.mxu3  ;;  %v1207_v14 = vsel %vm1206_vm5, %v2901_v38, %v1203_v56  ;;  %vm2132_vm5 = vcmask 261120  }
 0x167   : > { %v1532_v18 = vadd.f32 %v1531_v34, %v1530_v39  ;;  %v3704_v11 = vpop.f32.mrf.mxu0  ;;  %v1212_v4 = vsel %vm1209_vm6, %v1211_v59, %v1207_v14 }
 0x168   : > { %v1524_v25 = vpop.f32.mrf.mxu1  ;;  %v1216_v26 = vmul.f32 %v1212_v4, %v3580_v13  ;;  %v1215_v27 = vmul.f32 %v1212_v4, %v3578_v20  ;;  %v1213_v10 = vmul.f32 %v1212_v4, %v3569_v7  ;;  %v1214_v48 = vmul.f32 %v1212_v4, %v3572_v60 }
 0x169   : > { %v1670_v41 = vpop.f32.mrf.mxu2  ;;  %v1533_v33 = vrot.slane %v1532_v18, 2  ;;  %v1525_v3 = vadd.f32 %v1524_v25, %v1486_v40 }
 0x16a   : > { %v3714_v63 = vadd.f32 %v1717_v22, %v1670_v41  ;;  %v1219_v38 = vmul.f32 %v1215_v27, %v3652_v5  ;;  %v1217_v61 = vmul.f32 %v1213_v10, %v3654_v9  ;;  %v1218_v12 = vmul.f32 %v1214_v48, %v3676_v32 }
 0x16b   : > { %v1220_v13 = vmul.f32 %v1216_v26, %v3687_v15  ;;  %v1534_v20 = vadd.f32 %v1533_v33, %v1532_v18  ;;  %v3721_v7 = vadd.f32 %v1525_v3, %v3558_v19 }
 0x16c   : > { %v1221_v60 = vadd.f32 %v1217_v61, %v3674_v57  ;;  %v1222_v35 = vadd.f32 %v1218_v12, %v3664_v17  ;;  %v1223_v24 = vadd.f32 %v1219_v38, %v3700_v21 }
 0x16d   : > { %v1224_v40 = vadd.f32 %v1220_v13, %v3698_v1  ;;  %v1535_v46 = vrot.slane %v1534_v20, 1 }
 0x16e   : > { %v1878_v39 = vpop.f32.mrf.mxu3  ;;  %v3727_v50 = vadd.f32 %v1221_v60, %v851_v47  ;;  %v1229_v37 = vmul.f32 %v1221_v60, %v1221_v60  ;;  %v3729_v55 = vadd.f32 %v1222_v35, %v852_v52  ;;  %v1230_v19 = vmul.f32 %v1222_v35, %v1222_v35 }
 0x16f   : > { %v1748_v56 = vpop.f32.mrf.mxu0  ;;  %v3731_v34 = vadd.f32 %v1224_v40, %v854_v2  ;;  %v1232_v59 = vmul.f32 %v1224_v40, %v1224_v40  ;;  %v3733_v58 = vadd.f32 %v1223_v24, %v853_v30  ;;  %v1231_v22 = vmul.f32 %v1223_v24, %v1223_v24 }
 0x170   : > { %v1788_v14 = vpop.f32.mrf.mxu1  ;;  %v3735_v4 = vadd.f32 %v1229_v37, %v859_v8  ;;  %v3737_v25 = vadd.f32 %v1230_v19, %v860_v44  ;;  %v1536_v41 = vadd.f32 %v1535_v46, %v1534_v20  ;;  %v1702_v20 = vadd.f32 %v3636_v6, %v3638_v53 }
 0x171   : > { %v1839_v18 = vpop.f32.mrf.mxu2  ;;  %v3739_v47 = vadd.f32 %v1232_v59, %v862_v49  ;;  %v3741_v26 = vadd.f32 %v1231_v22, %v861_v51  ;;  %v1710_v60 = vadd.f32 %v3662_v43, %v3667_v28  ;;  %v1714_v6 = vadd.f32 %v3679_v16, %v3682_v45 }
 0x172   : > { %v1537_v27 = vmul.f32 %v1536_v41, %v3490_v36  ;;  %v1744_v44 = vadd.f32 %v3704_v11, %v1702_v20 }
 0x174   : > { %v3745_v2 = vsub.f32 %v3656_v0, %v1537_v27  ;;  %v3748_v30 = vsub.f32 %v3658_v54, %v1537_v27  ;;  %v3751_v10 = vsub.f32 %v3672_v42, %v1537_v27  ;;  %v3754_v48 = vsub.f32 %v3689_v23, %v1537_v27 }
 0x175   : > { %v1706_v23 = vadd.f32 %v3643_v29, %v3647_v62  ;;  %v1789_v59 = vadd.f32 %v1788_v14, %v1744_v44 }
 0x176   : > { %v1882_v52 = vpop.f32.mrf.mxu3  ;;  %v1542_v33 = vmul.f32 %v3745_v2, %v3745_v2  ;;  %v1543_v3 = vmul.f32 %v3748_v30, %v3748_v30  ;;  %v1544_v54 = vmul.f32 %v3751_v10, %v3751_v10  ;;  %v1545_v42 = vmul.f32 %v3754_v48, %v3754_v48 }
 0x177   : > { %v1753_v38 = vpop.f32.mrf.mxu0  ;;  %v1749_v35 = vadd.f32 %v1748_v56, %v1706_v23  ;;  %v1840_v53 = vadd.f32 %v1839_v18, %v1789_v59 }
 0x178   : > { %v1794_v61 = vpop.f32.mrf.mxu1  ;;  %v1546_v12 = vadd.f32 %v1543_v3, %v1542_v33  ;;  %v1754_v49 = vadd.f32 %v1753_v38, %v1710_v60 }
 0x179   : > { %v1843_v0 = vpop.f32.mrf.mxu2  ;;  %v1795_v51 = vadd.f32 %v1794_v61, %v1749_v35 }
 0x17a   : > { %v1547_v13 = vadd.f32 %v1546_v12, %v1544_v54  ;;  %v1879_v12 = vadd.f32 %v1878_v39, %v1840_v53 }
 0x17b   : > { %v1844_v41 = vadd.f32 %v1843_v0, %v1795_v51 }
 0x17c   : > { %v1548_v8 = vadd.f32 %v1547_v13, %v1545_v42 }
 0x17d   : > { %v1883_v11 = vadd.f32 %v1882_v52, %v1844_v41 }
 0x17e   : > { %v1549_v40 = vrot.slane %v1548_v8, 4 }
 0x17f   : > { %v1886_v24 = vpop.f32.mrf.mxu3  ;;  %v1758_v22 = vpop.f32.mrf.mxu0  ;;  %v1898_v0 = vadd.f32 %v1883_v11, %v1879_v12 }
 0x180   : > { %v1800_v46 = vpop.f32.mrf.mxu1  ;;  %v1550_v19 = vadd.f32 %v1549_v40, %v1548_v8  ;;  %v1759_v56 = vadd.f32 %v1758_v22, %v1714_v6 }
 0x181   : > { %v1847_v37 = vpop.f32.mrf.mxu2  ;;  %v1801_v29 = vadd.f32 %v1800_v46, %v1754_v49 }
 0x182   : > { %v1551_v62 = vrot.slane %v1550_v19, 2 }
 0x183   : > { %v1848_v43 = vadd.f32 %v1847_v37, %v1801_v29 }
 0x184   : > { %v1552_v27 = vadd.f32 %v1551_v62, %v1550_v19 }
 0x185   : > { %v1887_v14 = vadd.f32 %v1886_v24, %v1848_v43 }
 0x186   : > { %v1553_v28 = vrot.slane %v1552_v27, 1 }
 0x187   : > { %v1890_v33 = vpop.f32.mrf.mxu3  ;;  %v1763_v23 = vpop.f32.mrf.mxu0  ;;  %v1899_v8 = vadd.f32 %v1898_v0, %v1887_v14 }
 0x188   : > { %v1806_v3 = vpop.f32.mrf.mxu1  ;;  %v1554_v61 = vadd.f32 %v1553_v28, %v1552_v27  ;;  %v1764_v45 = vadd.f32 %v1763_v23, %v3714_v63 }
 0x189   : > { %v1851_v38 = vpop.f32.mrf.mxu2  ;;  %v1807_v54 = vadd.f32 %v1806_v3, %v1759_v56 }
 0x18a   : > { %v1555_v42 = vmul.f32 %v1554_v61, %v3530_v31 }
 0x18b   : > { %v1852_v13 = vadd.f32 %v1851_v38, %v1807_v54 }
 0x18c   : > { %2902 = vrsqrt.f32 %v1555_v42  ;;  %vm1563_vm7 = vcmp.eq.f32.partialorder %v1555_v42, inf  ;;  %v1566_v53 = vand.u32 2147483648, %v1555_v42  ;;  %vm1565_vm8 = vcmp.eq.f32.partialorder %v1555_v42, 0.0 }
 0x18d   : > { %v1891_v16 = vadd.f32 %v1890_v33, %v1852_v13 }
 0x18f   : > { %v1900_v18 = vadd.f32 %v1899_v8, %v1891_v16  ;;  %v1894_v40 = vpop.f32.mrf.mxu3 }
 0x190   : > { %v1812_v20 = vpop.f32.mrf.mxu1 }
 0x191   : > { %v1855_v60 = vpop.f32.mrf.mxu2  ;;  %v1813_v52 = vadd.f32 %v1812_v20, %v1764_v45  ;;  %v1901_v35 = vrot.slane %v1900_v18, 4 }
 0x192   : > { %v2903_v44 = vpop.eup %2902 }
 0x193   : > { %v1856_v49 = vadd.f32 %v1855_v60, %v1813_v52  ;;  %v1557_v39 = vmul.f32 %v2903_v44, %v1555_v42  ;;  %v1902_v24 = vadd.f32 %v1901_v35, %v1900_v18 }
 0x195   : > { %v1895_v51 = vadd.f32 %v1894_v40, %v1856_v49  ;;  %v1558_v46 = vmul.f32 %v2903_v44, %v1557_v39  ;;  %v1903_v37 = vrot.slane %v1902_v24, 2 }
 0x197   : > { %v3776_v19 = vadd.f32 %v1895_v51, %v3721_v7  ;;  %v1559_v59 = vmul.f32 0.5, %v1558_v46  ;;  %v1904_v22 = vadd.f32 %v1903_v37, %v1902_v24 }
 0x199   : > { %v1560_v29 = vsub.f32 1.5, %v1559_v59  ;;  %v1905_v63 = vrot.slane %v1904_v22, 1 }
 0x19b   : > { %v1561_v62 = vmul.f32 %v2903_v44, %v1560_v29  ;;  %v1906_v41 = vadd.f32 %v1905_v63, %v1904_v22 }
 0x19d   : > { %v1562_v27 = vmul.f32 %v1561_v62, %v1555_v42  ;;  %v1907_v6 = vmul.f32 %v1906_v41, %v3490_v36 }
 0x19f   : > { %v1564_v43 = vsel %vm1563_vm7, %v1555_v42, %v1562_v27  ;;  %v3779_v28 = vsub.f32 %v1879_v12, %v1907_v6  ;;  %v3781_v56 = vsub.f32 %v1883_v11, %v1907_v6  ;;  %v3783_v7 = vsub.f32 %v1887_v14, %v1907_v6 }
 0x1a0   : > { %v1567_v33 = vsel %vm1565_vm8, %v1566_v53, %v1564_v43  ;;  %v3789_v54 = vsub.f32 %v1891_v16, %v1907_v6 }
 0x1a1   : > { %v1568_v3 = vadd.f32 1e-06, %v1567_v33  ;;  %v1912_v38 = vmul.f32 %v3779_v28, %v3779_v28  ;;  %v1913_v61 = vmul.f32 %v3781_v56, %v3781_v56  ;;  %v1914_v42 = vmul.f32 %v3783_v7, %v3783_v7 }
 0x1a2   : > { %v1915_v11 = vmul.f32 %v3789_v54, %v3789_v54 }
 0x1a3   : > { %2904 = vrcp.f32 %v1568_v3  ;;  %v1916_v12 = vadd.f32 %v1913_v61, %v1912_v38  ;;  %v1580_v20 = vand.u32 2147483648, %v1568_v3  ;;  %v1578_v16 = vand.u32 2147483647, %v1568_v3 }
 0x1a4   : > { %vm1574_vm10 = vweird.f32 %v1568_v3 }
 0x1a5   : > { %v1917_v13 = vadd.f32 %v1916_v12, %v1914_v42  ;;  %v1581_v44 = vor.u32 1.1754944e-38, %v1580_v20  ;;  %vm1579_vm12 = vcmp.eq.f32.partialorder %v1578_v16, 8.507059e+37 }
 0x1a7   : > { %v1918_v14 = vadd.f32 %v1917_v13, %v1915_v11 }
 0x1a9   : > { %v2905_v0 = vpop.eup %2904  ;;  %v1919_v8 = vrot.slane %v1918_v14, 4 }
 0x1aa   : > { %v1570_v23 = vmul.f32 %v2905_v0, %v1568_v3  ;;  %vm1575_vm9 = vweird.f32 %v2905_v0 }
 0x1ab   : > { %v1920_v18 = vadd.f32 %v1919_v8, %v1918_v14  ;;  %vm1576_vm11 = vmor %vm1574_vm10, %vm1575_vm9 }
 0x1ac   : > { %v1571_v45 = vsub.f32 1.0, %v1570_v23 }
 0x1ad   : > { %v1921_v52 = vrot.slane %v1920_v18, 2 }
 0x1ae   : > { %v1572_v60 = vmul.f32 %v2905_v0, %v1571_v45 }
 0x1af   : > { %v1922_v40 = vadd.f32 %v1921_v52, %v1920_v18 }
 0x1b0   : > { %v1573_v35 = vadd.f32 %v2905_v0, %v1572_v60 }
 0x1b1   : > { %v1923_v39 = vrot.slane %v1922_v40, 1 }
 0x1b2   : > { %v1577_v49 = vsel %vm1576_vm11, %v2905_v0, %v1573_v35 }
 0x1b3   : > { %v1582_v24 = vsel %vm1579_vm12, %v1581_v44, %v1577_v49  ;;  %v1924_v22 = vadd.f32 %v1923_v39, %v1922_v40 }
 0x1b4   : > { %v1583_v51 = vmul.f32 %v1582_v24, %v3745_v2  ;;  %v1584_v46 = vmul.f32 %v1582_v24, %v3748_v30  ;;  %v1585_v37 = vmul.f32 %v1582_v24, %v3751_v10  ;;  %v1586_v59 = vmul.f32 %v1582_v24, %v3754_v48 }
 0x1b5   : > { %v1925_v27 = vmul.f32 %v1924_v22, %v3530_v31 }
 0x1b6   : > { %v1587_v29 = vmul.f32 %v1583_v51, %v3654_v9  ;;  %v1588_v63 = vmul.f32 %v1584_v46, %v3676_v32  ;;  %v1589_v62 = vmul.f32 %v1585_v37, %v3652_v5  ;;  %v1590_v41 = vmul.f32 %v1586_v59, %v3687_v15 }
 0x1b7   : > { %2906 = vrsqrt.f32 %v1925_v27  ;;  %vm1933_vm13 = vcmp.eq.f32.partialorder %v1925_v27, inf  ;;  %vm1935_vm14 = vcmp.eq.f32.partialorder %v1925_v27, 0.0 }
 0x1b8   : > { %v1591_v6 = vadd.f32 %v1587_v29, %v3674_v57  ;;  %v1592_v2 = vadd.f32 %v1588_v63, %v3664_v17  ;;  %v1593_v30 = vadd.f32 %v1589_v62, %v3700_v21  ;;  %v1594_v10 = vadd.f32 %v1590_v41, %v3698_v1 }
 0x1ba   : > { %v1595_v48 = vadd.f32 %v1591_v6, %v3727_v50  ;;  %v1596_v53 = vadd.f32 %v1592_v2, %v3729_v55  ;;  %v1597_v43 = vadd.f32 %v1593_v30, %v3733_v58  ;;  %v1598_v33 = vadd.f32 %v1594_v10, %v3731_v34 }
 0x1bb   : > { %v1599_v3 = vmul.f32 %v1591_v6, %v1591_v6  ;;  %v1600_v38 = vmul.f32 %v1592_v2, %v1592_v2  ;;  %v1601_v61 = vmul.f32 %v1593_v30, %v1593_v30  ;;  %v1602_v42 = vmul.f32 %v1594_v10, %v1594_v10 }
 0x1bc   : > { %v1936_v34 = vand.u32 2147483648, %v1925_v27 }
 0x1bd   : > { %v1603_v12 = vadd.f32 %v1599_v3, %v3735_v4  ;;  %v1604_v11 = vadd.f32 %v1600_v38, %v3737_v25  ;;  %v1605_v13 = vadd.f32 %v1601_v61, %v3741_v26  ;;  %v1606_v14 = vadd.f32 %v1602_v42, %v3739_v47  ;;  %v2907_v0 = vpop.eup %2906 }
 0x1be   : > { %v1927_v50 = vmul.f32 %v2907_v0, %v1925_v27 }
 0x1c0   : > { %v1928_v23 = vmul.f32 %v2907_v0, %v1927_v50 }
 0x1c2   : > { %v1929_v55 = vmul.f32 0.5, %v1928_v23 }
 0x1c4   : > { %v1930_v8 = vsub.f32 1.5, %v1929_v55 }
 0x1c6   : > { %v1931_v58 = vmul.f32 %v2907_v0, %v1930_v8 }
 0x1c8   : > { %v1932_v45 = vmul.f32 %v1931_v58, %v1925_v27 }
 0x1ca   : > { %v1934_v18 = vsel %vm1933_vm13, %v1925_v27, %v1932_v45 }
 0x1cb   : > { %v1937_v20 = vsel %vm1935_vm14, %v1936_v34, %v1934_v18 }
 0x1cc   : > { %v1938_v60 = vadd.f32 1e-06, %v1937_v20 }
 0x1ce   : > { %2908 = vrcp.f32 %v1938_v60  ;;  %v1950_v26 = vand.u32 2147483648, %v1938_v60  ;;  %v1948_v47 = vand.u32 2147483647, %v1938_v60  ;;  %vm1944_vm0 = vweird.f32 %v1938_v60 }
 0x1d0   : > { %v1951_v40 = vor.u32 1.1754944e-38, %v1950_v26  ;;  %vm1949_vm2 = vcmp.eq.f32.partialorder %v1948_v47, 8.507059e+37 }
 0x1d4   : > { %v2909_v4 = vpop.eup %2908 }
 0x1d5   : > { %v1940_v25 = vmul.f32 %v2909_v4, %v1938_v60  ;;  %vm1945_vm15 = vweird.f32 %v2909_v4 }
 0x1d6   : > { %vm1946_vm1 = vmor %vm1944_vm0, %vm1945_vm15 }
 0x1d7   : > { %v1941_v16 = vsub.f32 1.0, %v1940_v25 }
 0x1d9   : > { %v1942_v52 = vmul.f32 %v2909_v4, %v1941_v16 }
 0x1db   : > { %v1943_v35 = vadd.f32 %v2909_v4, %v1942_v52 }
 0x1dd   : > { %v1947_v44 = vsel %vm1946_vm1, %v2909_v4, %v1943_v35 }
 0x1de   : > { %v1952_v49 = vsel %vm1949_vm2, %v1951_v40, %v1947_v44 }
 0x1df   : > { %v1953_v39 = vmul.f32 %v1952_v49, %v3779_v28  ;;  %v1954_v24 = vmul.f32 %v1952_v49, %v3781_v56  ;;  %v1955_v51 = vmul.f32 %v1952_v49, %v3783_v7  ;;  %v1956_v46 = vmul.f32 %v1952_v49, %v3789_v54 }
 0x1e1   : > { %v1957_v37 = vmul.f32 %v1953_v39, %v3654_v9  ;;  %v1958_v59 = vmul.f32 %v1954_v24, %v3676_v32  ;;  %v1959_v22 = vmul.f32 %v1955_v51, %v3652_v5  ;;  %v1960_v29 = vmul.f32 %v1956_v46, %v3687_v15 }
 0x1e3   : > { %v1961_v63 = vadd.f32 %v1957_v37, %v3674_v57  ;;  %v1962_v62 = vadd.f32 %v1958_v59, %v3664_v17  ;;  %v1963_v28 = vadd.f32 %v1959_v22, %v3700_v21  ;;  %v1964_v56 = vadd.f32 %v1960_v29, %v3698_v1 }
 0x1e5   : > { %v1965_v41 = vadd.f32 %v1961_v63, %v1595_v48  ;;  %v1966_v7 = vadd.f32 %v1962_v62, %v1596_v53  ;;  %v1967_v27 = vadd.f32 %v1963_v28, %v1597_v43  ;;  %v1968_v54 = vadd.f32 %v1964_v56, %v1598_v33 }
 0x1e6   : > { %v1969_v6 = vmul.f32 %v1961_v63, %v1961_v63  ;;  %v1970_v9 = vmul.f32 %v1962_v62, %v1962_v62  ;;  %v1971_v2 = vmul.f32 %v1963_v28, %v1963_v28  ;;  %v1972_v32 = vmul.f32 %v1964_v56, %v1964_v56 }
 0x1e7   : > { %v1977_v30 = vmul.f32 %v1965_v41, %v1965_v41  ;;  %v1978_v5 = vmul.f32 %v1966_v7, %v1966_v7  ;;  %v1979_v10 = vmul.f32 %v1967_v27, %v1967_v27  ;;  %v1980_v15 = vmul.f32 %v1968_v54, %v1968_v54  ;;  %v2069_v27 = vpop.permute.xlu0 %2068  ;;  %v2074_v54 = vpop.permute.xlu2 %2073 }
 0x1e8   : > { %v1973_v3 = vadd.f32 %v1969_v6, %v1603_v12  ;;  %v1974_v57 = vadd.f32 %v1970_v9, %v1604_v11  ;;  %v1975_v38 = vadd.f32 %v1971_v2, %v1605_v13  ;;  %v1976_v17 = vadd.f32 %v1972_v32, %v1606_v14  ;;  %v2104_v9 = vld [vmem:[%s3933_s8] sm:$0xff]  ;;  %v2098_v32 = vpop.permute.xlu1 %2097 }
 0x1ea   : > { %v1981_v61 = vsub.f32 %v1977_v30, %v1973_v3  ;;  %v1982_v21 = vsub.f32 %v1978_v5, %v1974_v57  ;;  %v1983_v42 = vsub.f32 %v1979_v10, %v1975_v38  ;;  %v1984_v1 = vsub.f32 %v1980_v15, %v1976_v17 }
 0x1eb   : > { %v2134_v5 = vsel %vm2132_vm5, %v2104_v9, 0 }
 0x1ec   : > { %v1985_v48 = vmul.f32 0.5, %v1981_v61  ;;  %v1986_v53 = vmul.f32 0.5, %v1982_v21  ;;  %v1987_v43 = vmul.f32 0.5, %v1983_v42  ;;  %v1988_v0 = vmul.f32 0.5, %v1984_v1  ;;  %v2105_v21 = vld [vmem:[%s3933_s8 + $0x8] sm:$0xff] }
 0x1ed   : > { %v3834_v17 = vand.u32 4294901760, %v2134_v5 }
 0x1ee   : > { %v1997_v33 = vadd.f32 %v1986_v53, %v1985_v48 }
 0x1ef   : > { %v2093_v15 = vpop.permute.xlu0 %2092  ;;  %v2064_v3 = vpop.permute.xlu2 %2063 }
 0x1f0   : > { %v1998_v50 = vadd.f32 %v1997_v33, %v1987_v43 }
 0x1f2   : > { %v1999_v23 = vadd.f32 %v1998_v50, %v1988_v0 }
 0x1f4   : > { %v2000_v55 = vrot.slane %v1999_v23, 4 }
 0x1f6   : > { %v2001_v8 = vadd.f32 %v2000_v55, %v1999_v23  ;;  %v2059_v55 = vpop.permute.xlu1 %2058 }
 0x1f8   : > { %v2002_v58 = vrot.slane %v2001_v8, 2 }
 0x1fa   : > { %v2003_v45 = vadd.f32 %v2002_v58, %v2001_v8 }
 0x1fc   : > { %v2004_v34 = vrot.slane %v2003_v45, 1 }
 0x1fe   : > { %v2005_v12 = vadd.f32 %v2004_v34, %v2003_v45 }
 0x200   : > { %v2006_v11 = vmul.f32 %v2005_v12, %v3490_v36  ;;  %v2083_v12 = vpop.permute.xlu0 %2082 }
 0x202   : > { %v2010_v13 = vsub.f32 %v1988_v0, %v2006_v11  ;;  %v2007_v14 = vsub.f32 %v1985_v48, %v2006_v11  ;;  %v2008_v18 = vsub.f32 %v1986_v53, %v2006_v11  ;;  %v2009_v20 = vsub.f32 %v1987_v43, %v2006_v11  ;;  %v2088_v11 = vpop.permute.xlu2 %2087 }
 0x203   : > { %v3840_v53 = vsub.f32 %v2134_v5, %v3834_v17  ;;  %v2137_v43 = vsel %vm2132_vm5, %v2105_v21, 0 }
 0x204   : > { %v2011_v60 = vmul.f32 %v2007_v14, %v2007_v14  ;;  %v2012_v4 = vmul.f32 %v2008_v18, %v2008_v18  ;;  %v2013_v25 = vmul.f32 %v2009_v20, %v2009_v20  ;;  %v2014_v26 = vmul.f32 %v2010_v13, %v2010_v13 }
 0x206   : > { %v2015_v16 = vadd.f32 %v2012_v4, %v2011_v60  ;;  %v2167_v60 = vand.u32 4294901760, %v3840_v53  ;;  %v3844_v4 = vand.u32 4294901760, %v2137_v43 }
 0x208   : > { %v2016_v52 = vadd.f32 %v2015_v16, %v2013_v25 }
 0x20a   : > { %v2017_v47 = vadd.f32 %v2016_v52, %v2014_v26 }
 0x20c   : > { %v2018_v35 = vrot.slane %v2017_v47, 4 }
 0x20e   : > { %v2019_v40 = vadd.f32 %v2018_v35, %v2017_v47  ;;  %v2168_v35 = vsub.f32 %v3840_v53, %v2167_v60 }
 0x210   : > { %v2020_v44 = vrot.slane %v2019_v40, 2 }
 0x212   : > { %v2021_v49 = vadd.f32 %v2020_v44, %v2019_v40  ;;  %v2174_v40 = vsub.f32 %v2137_v43, %v3844_v4 }
 0x214   : > { %v2022_v39 = vrot.slane %v2021_v49, 1 }
 0x216   : > { %v2023_v24 = vadd.f32 %v2022_v39, %v2021_v49 }
 0x218   : > { %v2024_v51 = vmul.f32 %v2023_v24, %v3530_v31 }
 0x21a   : > { %2910 = vrsqrt.f32 %v2024_v51  ;;  %vm2032_vm3 = vcmp.eq.f32.partialorder %v2024_v51, inf  ;;  %v2035_v28 = vand.u32 2147483648, %v2024_v51  ;;  %vm2034_vm4 = vcmp.eq.f32.partialorder %v2024_v51, 0.0 }
 0x220   : > { %v2911_v46 = vpop.eup %2910 }
 0x221   : > { %v2026_v37 = vmul.f32 %v2911_v46, %v2024_v51 }
 0x223   : > { %v2027_v59 = vmul.f32 %v2911_v46, %v2026_v37 }
 0x225   : > { %v2028_v22 = vmul.f32 0.5, %v2027_v59 }
 0x227   : > { %v2029_v29 = vsub.f32 1.5, %v2028_v22  ;;  %v2169_v22 = vand.u32 4294901760, %v2168_v35 }
 0x229   : > { %v2030_v63 = vmul.f32 %v2911_v46, %v2029_v29  ;;  %v2175_v29 = vand.u32 4294901760, %v2174_v40 }
 0x22b   : > { %v2031_v62 = vmul.f32 %v2030_v63, %v2024_v51 }
 0x22d   : > { %v2033_v56 = vsel %vm2032_vm3, %v2024_v51, %v2031_v62 }
 0x22e   : > { %v2036_v41 = vsel %vm2034_vm4, %v2035_v28, %v2033_v56 }
 0x22f   : > { %v2037_v7 = vadd.f32 1e-06, %v2036_v41  ;;  %v2107_v41 = vld [vmem:[%s3933_s8 + $0x18] sm:$0xff] }
 0x231   : > { %2912 = vrcp.f32 %v2037_v7  ;;  %v2049_v10 = vand.u32 2147483648, %v2037_v7  ;;  %v2047_v38 = vand.u32 2147483647, %v2037_v7  ;;  %vm2043_vm7 = vweird.f32 %v2037_v7 }
 0x233   : > { %v2050_v42 = vor.u32 1.1754944e-38, %v2049_v10  ;;  %vm2048_vm9 = vcmp.eq.f32.partialorder %v2047_v38, 8.507059e+37 }
 0x237   : > { %v2913_v6 = vpop.eup %2912 }
 0x238   : > { %v2039_v2 = vmul.f32 %v2913_v6, %v2037_v7  ;;  %vm2044_vm6 = vweird.f32 %v2913_v6 }
 0x239   : > { %vm2045_vm8 = vmor %vm2043_vm7, %vm2044_vm6 }
 0x23a   : > { %v2040_v30 = vsub.f32 1.0, %v2039_v2 }
 0x23c   : > { %v2041_v57 = vmul.f32 %v2913_v6, %v2040_v30 }
 0x23e   : > { %v2042_v61 = vadd.f32 %v2913_v6, %v2041_v57 }
 0x240   : > { %v2046_v1 = vsel %vm2045_vm8, %v2913_v6, %v2042_v61 }
 0x241   : > { %v2051_v48 = vsel %vm2048_vm9, %v2050_v42, %v2046_v1 }
 0x242   : > { %v2054_v33 = vmul.f32 %v2051_v48, %v2009_v20  ;;  %v2055_v0 = vmul.f32 %v2051_v48, %v2010_v13  ;;  %v2052_v50 = vmul.f32 %v2051_v48, %v2007_v14  ;;  %v2053_v23 = vmul.f32 %v2051_v48, %v2008_v18  ;;  %v2106_v13 = vld [vmem:[%s3933_s8 + $0x10] sm:$0xff] }
 0x243   : > { %v2140_v44 = vsel %vm2132_vm5, %v2106_v13, 0 }
 0x244   : > { %v2078_v8 = vmul.f32 %v2069_v27, %v2054_v33  ;;  %v2079_v58 = vmul.f32 %v2074_v54, %v2055_v0  ;;  %v2076_v45 = vmul.f32 %v2059_v55, %v2052_v50  ;;  %v2077_v34 = vmul.f32 %v2064_v3, %v2053_v23 }
 0x245   : > { %v3855_v63 = vand.u32 4294901760, %v2140_v44  ;;  %v2176_v54 = vsub.f32 %v2174_v40, %v2175_v29 }
 0x246   : > { %v2103_v25 = vadd.f32 %v2098_v32, %v2079_v58  ;;  %v2102_v16 = vadd.f32 %v2093_v15, %v2078_v8  ;;  %v2100_v26 = vadd.f32 %v2083_v12, %v2076_v45  ;;  %v2101_v52 = vadd.f32 %v2088_v11, %v2077_v34  ;;  %v2115_v12 = vpop.permute.xlu1 %2114 }
 0x247   : > { %v2182_v6 = vsub.f32 %v2140_v44, %v3855_v63  ;;  %v2143_v32 = vsel %vm2132_vm5, %v2107_v41, 0  ;;  %v2177_v5 = vand.u32 4294901760, %v2176_v54 }
 0x248   : > { %v2157_v14 = vand.u32 4294901760, %v2103_v25  ;;  %v2159_v18 = vand.u32 4294901760, %v2102_v16  ;;  %v3849_v20 = vand.u32 4294901760, %v2100_v26  ;;  %v2161_v47 = vand.u32 4294901760, %v2101_v52 }
 0x249   : > { %v2183_v10 = vand.u32 4294901760, %v2182_v6  ;;  %v2189_v15 = vand.u32 4294901760, %v2143_v32 }
 0x24a   : > { %v2211_v49 = vsub.f32 %v2103_v25, %v2157_v14  ;;  %v2217_v39 = vsub.f32 %v2102_v16, %v2159_v18  ;;  %v2229_v24 = vsub.f32 %v2100_v26, %v3849_v20  ;;  %v2223_v51 = vsub.f32 %v2101_v52, %v2161_v47  ;;  %2158 = vmatpush.msra.mxu0 %v2157_v14  ;;  %v2125_v26 = vpop.permute.xlu0 %2124 }
 0x24b   : > { %2309 = vmatpush.msra.mxu3 %v2157_v14  ;;  %v2184_v57 = vsub.f32 %v2182_v6, %v2183_v10  ;;  %v2190_v38 = vsub.f32 %v2143_v32, %v2189_v15 }
 0x24c   : > { %2160 = vmatpush.msra.mxu0 %v2159_v18  ;;  %2265 = vmatpush.msra.mxu2 %v2211_v49  ;;  %v2212_v46 = vand.u32 4294901760, %v2211_v49  ;;  %v2218_v37 = vand.u32 4294901760, %v2217_v39  ;;  %v2224_v59 = vand.u32 4294901760, %v2223_v51  ;;  %v2230_v56 = vand.u32 4294901760, %v2229_v24 }
 0x24d   : > { %2311 = vmatpush.msra.mxu3 %v2159_v18  ;;  %v2185_v61 = vand.u32 4294901760, %v2184_v57  ;;  %v2191_v21 = vand.u32 4294901760, %v2190_v38 }
 0x24e   : > { %2162 = vmatpush.msra.mxu0 %v2161_v47  ;;  %2268 = vmatpush.msra.mxu2 %v2217_v39  ;;  %v2213_v62 = vsub.f32 %v2211_v49, %v2212_v46  ;;  %v2219_v28 = vsub.f32 %v2217_v39, %v2218_v37  ;;  %v2225_v27 = vsub.f32 %v2223_v51, %v2224_v59 }
 0x24f   : > { %2313 = vmatpush.msra.mxu3 %v2161_v47  ;;  %v2231_v2 = vsub.f32 %v2229_v24, %v2230_v56  ;;  %v2192_v42 = vsub.f32 %v2190_v38, %v2191_v21 }
 0x250   : > { %2164 = vmatpush.msra.mxu0 %v3849_v20  ;;  %2271 = vmatpush.msra.mxu2 %v2223_v51  ;;  %v2214_v7 = vand.u32 4294901760, %v2213_v62  ;;  %v2220_v9 = vand.u32 4294901760, %v2219_v28  ;;  %v2226_v30 = vand.u32 4294901760, %v2225_v27 }
 0x251   : > { %2315 = vmatpush.msra.mxu3 %v3849_v20  ;;  %2170 = vmatmul.f32.vlgmr.msra.gmra.mxu0 %v2169_v22  ;;  %v2232_v3 = vand.u32 4294901760, %v2231_v2  ;;  %v2193_v1 = vand.u32 4294901760, %v2192_v42 }
 0x252   : > { %2356 = vmatpush.msrb.mxu0 %v2212_v46  ;;  %2215 = vmatpush.msra.mxu1 %v2214_v7 }
 0x253   : > { %2274 = vmatpush.msra.mxu2 %v2229_v24  ;;  %2319 = vmatmul.f32.vlgmr.msra.gmra.mxu3 %v2167_v60 }
 0x254   : > { %2360 = vmatpush.msrb.mxu0 %v2218_v37  ;;  %2221 = vmatpush.msra.mxu1 %v2220_v9 }
 0x255   : > { %2277 = vmatmul.f32.vlgmr.msra.gmra.mxu2 %v3840_v53 }
 0x256   : > { %2364 = vmatpush.msrb.mxu0 %v2224_v59  ;;  %2227 = vmatpush.msra.mxu1 %v2226_v30 }
 0x258   : > { %2368 = vmatpush.msrb.mxu0 %v2230_v56  ;;  %2233 = vmatpush.msra.mxu1 %v2232_v3 }
 0x259   : > { %2178 = vmatmul.f32.gmra.mxu0 %v2177_v5  ;;  %2235 = vmatmul.f32.vlgmr.msra.gmra.mxu1 %v3834_v17 }
 0x25a   : > { %2399 = vmatpush.msrb.mxu1 %v2157_v14 }
 0x25b   : > { %2325 = vmatmul.f32.gmra.mxu3 %v2175_v29 }
 0x25c   : > { %2401 = vmatpush.msrb.mxu1 %v2159_v18 }
 0x25d   : > { %2282 = vmatmul.f32.gmra.mxu2 %v2174_v40  ;;  %v2130_v40 = vpop.permute.xlu1 %2129 }
 0x25e   : > { %2403 = vmatpush.msrb.mxu1 %v2161_v47 }
 0x260   : > { %2405 = vmatpush.msrb.mxu1 %v3849_v20 }
 0x261   : > { %2186 = vmatmul.f32.gmra.mxu0 %v2185_v61  ;;  %2239 = vmatmul.f32.gmra.mxu1 %v3844_v4 }
 0x263   : > { %2331 = vmatmul.f32.gmra.mxu3 %v2183_v10 }
 0x265   : > { %2287 = vmatmul.f32.gmra.mxu2 %v2182_v6 }
 0x269   : > { %2194 = vmatmul.f32.gmra.mxu0 %v2193_v1  ;;  %2243 = vmatmul.f32.gmra.mxu1 %v3855_v63 }
 0x26b   : > { %2337 = vmatmul.f32.gmra.mxu3 %v2191_v21 }
 0x26d   : > { %2292 = vmatmul.f32.gmra.mxu2 %v2190_v38 }
 0x271   : > { %2247 = vmatmul.f32.gmra.mxu1 %v2189_v15  ;;  %2370 = vmatmul.f32.vlgmr.msrb.gmra.mxu0 %v3834_v17 }
 0x279   : > { %2374 = vmatmul.f32.gmra.mxu0 %v3844_v4  ;;  %2407 = vmatmul.f32.vlgmr.msrb.gmra.mxu1 %v3834_v17 }
 0x281   : > { %2378 = vmatmul.f32.gmra.mxu0 %v3855_v63  ;;  %2411 = vmatmul.f32.gmra.mxu1 %v3844_v4  ;;  %v2120_v4 = vpop.permute.xlu2 %2119 }
 0x289   : > { %2382 = vmatmul.f32.gmra.mxu0 %v2189_v15  ;;  %2415 = vmatmul.f32.gmra.mxu1 %v3855_v63 }
 0x291   : > { %2419 = vmatmul.f32.gmra.mxu1 %v2189_v15 }
 0x2ce   : > { %v2171_v48 = vpop.f32.mrf.mxu0 }
 0x2cf   : > { %v2172_v52 = vadd.f32 %v2171_v48, %v2115_v12 }
 0x2d6   : > { %v2179_v53 = vpop.f32.mrf.mxu0  ;;  %v2236_v43 = vpop.f32.mrf.mxu1 }
 0x2d7   : > { %v2320_v8 = vpop.f32.mrf.mxu3  ;;  %v2180_v16 = vadd.f32 %v2179_v53, %v2120_v4  ;;  %v2237_v47 = vadd.f32 %v2236_v43, %v2172_v52 }
 0x2d8   : > { %v2278_v50 = vpop.f32.mrf.mxu2 }
 0x2d9   : > { %v2279_v24 = vadd.f32 %v2278_v50, %v2237_v47 }
 0x2db   : > { %v2321_v29 = vadd.f32 %v2320_v8, %v2279_v24 }
 0x2de   : > { %v2187_v33 = vpop.f32.mrf.mxu0  ;;  %v2240_v0 = vpop.f32.mrf.mxu1 }
 0x2df   : > { %v2326_v34 = vpop.f32.mrf.mxu3  ;;  %v2188_v13 = vadd.f32 %v2187_v33, %v2125_v26  ;;  %v2241_v14 = vadd.f32 %v2240_v0, %v2180_v16 }
 0x2e0   : > { %v2283_v17 = vpop.f32.mrf.mxu2 }
 0x2e1   : > { %v2284_v49 = vadd.f32 %v2283_v17, %v2241_v14 }
 0x2e3   : > { %v2327_v59 = vadd.f32 %v2326_v34, %v2284_v49  ;;  %v2503_v49 = vpop.permute.xlu0 %2502 }
 0x2e6   : > { %v2195_v23 = vpop.f32.mrf.mxu0  ;;  %v2244_v55 = vpop.f32.mrf.mxu1 }
 0x2e7   : > { %v2332_v18 = vpop.f32.mrf.mxu3  ;;  %v2245_v35 = vadd.f32 %v2244_v55, %v2188_v13  ;;  %v2196_v39 = vadd.f32 %v2195_v23, %v2130_v40 }
 0x2e8   : > { %v2288_v25 = vpop.f32.mrf.mxu2 }
 0x2e9   : > { %v2289_v51 = vadd.f32 %v2288_v25, %v2245_v35 }
 0x2eb   : > { %v2333_v63 = vadd.f32 %v2332_v18, %v2289_v51 }
 0x2ee   : > { %v2248_v58 = vpop.f32.mrf.mxu1  ;;  %v2371_v45 = vpop.f32.mrf.mxu0 }
 0x2ef   : > { %v2249_v46 = vadd.f32 %v2248_v58, %v2196_v39  ;;  %v2338_v56 = vpop.f32.mrf.mxu3  ;;  %v2372_v41 = vadd.f32 %v2371_v45, %v2321_v29  ;;  %v2508_v39 = vpop.permute.xlu2 %2507 }
 0x2f0   : > { %v2293_v37 = vpop.f32.mrf.mxu2 }
 0x2f1   : > { %v2294_v62 = vadd.f32 %v2293_v37, %v2249_v46  ;;  %v2532_v46 = vpop.permute.xlu1 %2531 }
 0x2f3   : > { %v2339_v6 = vadd.f32 %v2338_v56, %v2294_v62 }
 0x2f6   : > { %v2375_v11 = vpop.f32.mrf.mxu0  ;;  %v2408_v60 = vpop.f32.mrf.mxu1 }
 0x2f7   : > { %v2376_v28 = vadd.f32 %v2375_v11, %v2327_v59  ;;  %v2409_v9 = vadd.f32 %v2408_v60, %v2372_v41  ;;  %v2498_v29 = vpop.permute.xlu2 %2497 }
 0x2fe   : > { %v2412_v20 = vpop.f32.mrf.mxu1  ;;  %v2379_v44 = vpop.f32.mrf.mxu0 }
 0x2ff   : > { %v2380_v7 = vadd.f32 %v2379_v44, %v2333_v63  ;;  %v2413_v27 = vadd.f32 %v2412_v20, %v2376_v28 }
 0x301   : > { %v2431_v32 = vadd.f32 %v2413_v27, %v2409_v9 }
 0x306   : > { %v2416_v22 = vpop.f32.mrf.mxu1  ;;  %v2383_v54 = vpop.f32.mrf.mxu0 }
 0x307   : > { %v2417_v2 = vadd.f32 %v2416_v22, %v2380_v7  ;;  %v2384_v30 = vadd.f32 %v2383_v54, %v2339_v6  ;;  %v2527_v22 = vpop.permute.xlu0 %2526 }
 0x309   : > { %v2432_v10 = vadd.f32 %v2431_v32, %v2417_v2 }
 0x30e   : > { %v2420_v5 = vpop.f32.mrf.mxu1 }
 0x30f   : > { %v2421_v15 = vadd.f32 %v2420_v5, %v2384_v30  ;;  %v2493_v5 = vpop.permute.xlu1 %2492 }
 0x311   : > { %v2433_v3 = vadd.f32 %v2432_v10, %v2421_v15 }
 0x313   : > { %v2434_v57 = vrot.slane %v2433_v3, 4 }
 0x315   : > { %v2435_v38 = vadd.f32 %v2434_v57, %v2433_v3 }
 0x317   : > { %v2436_v61 = vrot.slane %v2435_v38, 2 }
 0x319   : > { %v2437_v21 = vadd.f32 %v2436_v61, %v2435_v38  ;;  %v2517_v38 = vpop.permute.xlu0 %2516  ;;  %v2522_v61 = vpop.permute.xlu2 %2521 }
 0x31b   : > { %v2438_v42 = vrot.slane %v2437_v21, 1 }
 0x31d   : > { %v2439_v1 = vadd.f32 %v2438_v42, %v2437_v21 }
 0x31f   : > { %v2440_v48 = vmul.f32 %v2439_v1, %v3490_v36 }
 0x321   : > { %v2441_v53 = vsub.f32 %v2409_v9, %v2440_v48  ;;  %v2442_v43 = vsub.f32 %v2413_v27, %v2440_v48  ;;  %v2443_v33 = vsub.f32 %v2417_v2, %v2440_v48  ;;  %v2444_v0 = vsub.f32 %v2421_v15, %v2440_v48 }
 0x323   : > { %v2445_v50 = vmul.f32 %v2441_v53, %v2441_v53  ;;  %v2446_v23 = vmul.f32 %v2442_v43, %v2442_v43  ;;  %v2447_v55 = vmul.f32 %v2443_v33, %v2443_v33  ;;  %v2448_v58 = vmul.f32 %v2444_v0, %v2444_v0 }
 0x325   : > { %v2449_v8 = vadd.f32 %v2446_v23, %v2445_v50 }
 0x327   : > { %v2450_v45 = vadd.f32 %v2449_v8, %v2447_v55 }
 0x329   : > { %v2451_v17 = vadd.f32 %v2450_v45, %v2448_v58 }
 0x32b   : > { %v2452_v34 = vrot.slane %v2451_v17, 4 }
 0x32d   : > { %v2453_v12 = vadd.f32 %v2452_v34, %v2451_v17 }
 0x32f   : > { %v2454_v11 = vrot.slane %v2453_v12, 2 }
 0x331   : > { %v2455_v60 = vadd.f32 %v2454_v11, %v2453_v12 }
 0x333   : > { %v2456_v4 = vrot.slane %v2455_v60, 1 }
 0x335   : > { %v2457_v25 = vadd.f32 %v2456_v4, %v2455_v60 }
 0x337   : > { %v2458_v16 = vmul.f32 %v2457_v25, %v3530_v31  ;;  %v2538_v31 = vld [vmem:[%s3935_s10] sm:$0x1] }
 0x338   : > { %v2540_v59 = vsel %vm2132_vm5, %v2538_v31, 0  ;;  %v2731_v31 = vpop.permute.xlu1 %2730 }
 0x339   : > { %2914 = vrsqrt.f32 %v2458_v16  ;;  %vm2466_vm10 = vcmp.eq.f32.partialorder %v2458_v16, inf  ;;  %v2469_v47 = vand.u32 2147483648, %v2458_v16  ;;  %vm2468_vm11 = vcmp.eq.f32.partialorder %v2458_v16, 0.0 }
 0x33a   : > { %v3881_v56 = vand.u32 4294901760, %v2540_v59 }
 0x33c   : > { %v3884_v6 = vsub.f32 %v2540_v59, %v3881_v56 }
 0x33e   : > { %v2564_v21 = vand.u32 4294901760, %v3884_v6 }
 0x33f   : > { %v2915_v36 = vpop.eup %2914 }
 0x340   : > { %v2460_v26 = vmul.f32 %v2915_v36, %v2458_v16 }
 0x342   : > { %v2461_v52 = vmul.f32 %v2915_v36, %v2460_v26 }
 0x344   : > { %v2462_v13 = vmul.f32 0.5, %v2461_v52 }
 0x346   : > { %v2463_v14 = vsub.f32 1.5, %v2462_v13 }
 0x348   : > { %v2464_v18 = vmul.f32 %v2915_v36, %v2463_v14 }
 0x34a   : > { %v2465_v20 = vmul.f32 %v2464_v18, %v2458_v16 }
 0x34c   : > { %v2467_v35 = vsel %vm2466_vm10, %v2458_v16, %v2465_v20 }
 0x34d   : > { %v2470_v40 = vsel %vm2468_vm11, %v2469_v47, %v2467_v35 }
 0x34e   : > { %v2471_v44 = vadd.f32 1e-06, %v2470_v40 }
 0x350   : > { %2916 = vrcp.f32 %v2471_v44  ;;  %v2483_v63 = vand.u32 2147483648, %v2471_v44  ;;  %v2481_v28 = vand.u32 2147483647, %v2471_v44  ;;  %vm2477_vm13 = vweird.f32 %v2471_v44 }
 0x352   : > { %v2484_v7 = vor.u32 1.1754944e-38, %v2483_v63  ;;  %vm2482_vm15 = vcmp.eq.f32.partialorder %v2481_v28, 8.507059e+37 }
 0x356   : > { %v2917_v24 = vpop.eup %2916 }
 0x357   : > { %v2473_v51 = vmul.f32 %v2917_v24, %v2471_v44  ;;  %vm2478_vm12 = vweird.f32 %v2917_v24 }
 0x358   : > { %vm2479_vm14 = vmor %vm2477_vm13, %vm2478_vm12 }
 0x359   : > { %v2474_v37 = vsub.f32 1.0, %v2473_v51 }
 0x35b   : > { %v2475_v62 = vmul.f32 %v2917_v24, %v2474_v37  ;;  %v2733_v37 = vperm.slane %v2731_v31, 0 }
 0x35d   : > { %v2476_v41 = vadd.f32 %v2917_v24, %v2475_v62 }
 0x35f   : > { %v2480_v27 = vsel %vm2479_vm14, %v2917_v24, %v2476_v41 }
 0x360   : > { %v2485_v54 = vsel %vm2482_vm15, %v2484_v7, %v2480_v27 }
 0x361   : > { %v2486_v9 = vmul.f32 %v2485_v54, %v2441_v53  ;;  %v2487_v2 = vmul.f32 %v2485_v54, %v2442_v43  ;;  %v2488_v32 = vmul.f32 %v2485_v54, %v2443_v33  ;;  %v2489_v30 = vmul.f32 %v2485_v54, %v2444_v0 }
 0x362   : > { %v2565_v43 = vsub.f32 %v3884_v6, %v2564_v21 }
 0x363   : > { %v2513_v10 = vmul.f32 %v2508_v39, %v2489_v30  ;;  %v2512_v15 = vmul.f32 %v2503_v49, %v2488_v32  ;;  %v2511_v3 = vmul.f32 %v2498_v29, %v2487_v2  ;;  %v2510_v57 = vmul.f32 %v2493_v5, %v2486_v9 }
 0x364   : > { %v2566_v11 = vand.u32 4294901760, %v2565_v43 }
 0x365   : > { %v2537_v42 = vadd.f32 %v2532_v46, %v2513_v10  ;;  %v2536_v1 = vadd.f32 %v2527_v22, %v2512_v15  ;;  %v2535_v48 = vadd.f32 %v2522_v61, %v2511_v3  ;;  %v2534_v50 = vadd.f32 %v2517_v38, %v2510_v57 }
 0x367   : > { %v2554_v23 = vand.u32 4294901760, %v2537_v42  ;;  %v2556_v55 = vand.u32 4294901760, %v2536_v1  ;;  %v2558_v8 = vand.u32 4294901760, %v2535_v48  ;;  %v2560_v53 = vand.u32 4294901760, %v2534_v50 }
 0x369   : > { %2555 = vmatpush.msrb.mxu2 %v2554_v23  ;;  %v2584_v33 = vsub.f32 %v2537_v42, %v2554_v23  ;;  %v2590_v0 = vsub.f32 %v2536_v1, %v2556_v55  ;;  %v2596_v58 = vsub.f32 %v2535_v48, %v2558_v8  ;;  %v2602_v45 = vsub.f32 %v2534_v50, %v2560_v53 }
 0x36b   : > { %2557 = vmatpush.msrb.mxu2 %v2556_v55  ;;  %v2585_v17 = vand.u32 4294901760, %v2584_v33  ;;  %v2591_v34 = vand.u32 4294901760, %v2590_v0  ;;  %v2597_v12 = vand.u32 4294901760, %v2596_v58  ;;  %v2603_v25 = vand.u32 4294901760, %v2602_v45 }
 0x36d   : > { %2559 = vmatpush.msrb.mxu2 %v2558_v8  ;;  %v2586_v60 = vsub.f32 %v2584_v33, %v2585_v17  ;;  %v2592_v4 = vsub.f32 %v2590_v0, %v2591_v34  ;;  %v2598_v36 = vsub.f32 %v2596_v58, %v2597_v12  ;;  %v2604_v52 = vsub.f32 %v2602_v45, %v2603_v25 }
 0x36f   : > { %2561 = vmatpush.msrb.mxu2 %v2560_v53  ;;  %v2587_v16 = vand.u32 4294901760, %v2586_v60  ;;  %v2593_v26 = vand.u32 4294901760, %v2592_v4  ;;  %v2599_v13 = vand.u32 4294901760, %v2598_v36  ;;  %v2605_v14 = vand.u32 4294901760, %v2604_v52 }
 0x370   : > { %2567 = vmatmul.f32.vlgmr.msrb.gmra.mxu2 %v2566_v11 }
 0x371   : > { %2626 = vmatpush.msra.mxu2 %v2584_v33  ;;  %2588 = vmatpush.msrb.mxu3 %v2587_v16 }
 0x373   : > { %2629 = vmatpush.msra.mxu2 %v2590_v0  ;;  %2594 = vmatpush.msrb.mxu3 %v2593_v26 }
 0x375   : > { %2632 = vmatpush.msra.mxu2 %v2596_v58  ;;  %2600 = vmatpush.msrb.mxu3 %v2599_v13 }
 0x377   : > { %2635 = vmatpush.msra.mxu2 %v2602_v45  ;;  %2606 = vmatpush.msrb.mxu3 %v2605_v14 }
 0x378   : > { %2608 = vmatmul.f32.vlgmr.msrb.gmra.mxu3 %v3881_v56  ;;  %2638 = vmatmul.f32.vlgmr.msra.gmra.mxu2 %v3884_v6 }
 0x379   : > { %2684 = vmatpush.msrb.mxu2 %v2585_v17  ;;  %2655 = vmatpush.msra.mxu3 %v2554_v23 }
 0x37b   : > { %2688 = vmatpush.msrb.mxu2 %v2591_v34  ;;  %2657 = vmatpush.msra.mxu3 %v2556_v55 }
 0x37d   : > { %2692 = vmatpush.msrb.mxu2 %v2597_v12  ;;  %2659 = vmatpush.msra.mxu3 %v2558_v8 }
 0x37f   : > { %2696 = vmatpush.msrb.mxu2 %v2603_v25  ;;  %2661 = vmatpush.msra.mxu3 %v2560_v53 }
 0x380   : > { %2665 = vmatmul.f32.vlgmr.msra.gmra.mxu3 %v2564_v21  ;;  %2698 = vmatmul.f32.vlgmr.msrb.gmra.mxu2 %v3881_v56 }
 0x381   : > { %2715 = vmatpush.msrb.mxu3 %v2554_v23 }
 0x383   : > { %2717 = vmatpush.msrb.mxu3 %v2556_v55 }
 0x385   : > { %2719 = vmatpush.msrb.mxu3 %v2558_v8 }
 0x387   : > { %2721 = vmatpush.msrb.mxu3 %v2560_v53 }
 0x388   : > { %2723 = vmatmul.f32.vlgmr.msrb.gmra.mxu3 %v3881_v56 }
 0x3f3   : > { %v2568_v18 = vpop.f32.mrf.mxu2 }
 0x3f4   : > { %v2569_v35 = vadd.f32 %v2568_v18, %v3776_v19 }
 0x3fb   : > { %v2609_v20 = vpop.f32.mrf.mxu3  ;;  %v2639_v47 = vpop.f32.mrf.mxu2 }
 0x3fc   : > { %v2610_v40 = vadd.f32 %v2609_v20, %v2569_v35 }
 0x3fe   : > { %v2640_v49 = vadd.f32 %v2639_v47, %v2610_v40 }
 0x403   : > { %v2666_v44 = vpop.f32.mrf.mxu3  ;;  %v2699_v24 = vpop.f32.mrf.mxu2 }
 0x404   : > { %v2667_v39 = vadd.f32 %v2666_v44, %v2640_v49 }
 0x406   : > { %v2700_v51 = vadd.f32 %v2699_v24, %v2667_v39 }
 0x40b   : > { %v2724_v46 = vpop.f32.mrf.mxu3 }
 0x40c   : > { %v2725_v59 = vadd.f32 %v2724_v46, %v2700_v51 }
 0x40e   : > { %v2734_v19 = vadd.f32 %v2733_v37, %v2725_v59 }
 0x410   : > { %2735 = vst [vmem:[%s405_s21] sm:$0x1] %v2734_v19 }
 0x411   : > { %2945 = shalt.err (!%p2942_p3)
}
 0x412   : > { %2843 = dma.vmem_to_hbm [thread:$0]  (%p3093_p5), %s2748_s22, 16, %s2750_s27, %s2737_s29  }
 0x413 PF: > { %p2849_p4 = scmp.ge.s32.totalorder %s2980_s26, 2  ;;  %s2761_s17 = sand.u32 1, %s2968_s23  }
 0x414   : > { %s2762_s21 = scalar_lea.sflag [#allocation4], %s2761_s17 }
 0x415   : > { %p2846_p7 = pnand %p2849_p4, %p3097_p6 }
 0x417   : > { %p2847_p8 = pneg %p2846_p7 }
 0x419   : > { %2963 = dma.done.wait (%p2847_p8), %s2762_s21, 16  }
 0x41a   : > { %2965 = vsyncadd (%p2847_p8), %s2762_s21, 4294967280  ;;  %p24_p9 = scmp.ge.s32.totalorder %s3080_s28, 4   ;;  %s3958_s23 = smov %s2972_s24 }
 0x41b   : > { %s3959_s24 = smov %s2976_s25  ;;  %s3960_s25 = smov %s3091_s13 }
 0x41c   : > { %s3961_s26 = smov %s3080_s28  ;;  %26 = sbr.rel (!%p24_p9) target bundleno = 6 (0x6), region = 103 }
 0x421   :  { %2767 = vsyncpa [#allocation4], 1 }
 0x422   :  { %2769 = vsyncpa [#allocation4 + $0x1], 1 }

</bundles_post_ra>
